<compile_context>
chip_gen: v6e
topology: v6e:2x2x1
jax: 0.10.0
libtpu: 0.0.40
codegen_flags: <defaults>
</compile_context>

<pallas_src>
import jax
import jax.numpy as jnp
from jax import lax
from jax.experimental import pallas as pl
from jax.experimental.pallas import tpu as pltpu

EMB_DIM = 384     # 3 * 128 lanes
HID_DIM = 256     # 2 * 128 lanes
LN_EPS = 1e-5


def _round_up(x, m):
    return ((x + m - 1) // m) * m


def _cdiv(a, b):
    return (a + b - 1) // b


def _is_megacore_chip():
    """True for chips with 2 TensorCores sharing the 'parallel' grid axis (v7x)."""
    try:
        kind = jax.devices()[0].device_kind.lower()
        return ("v7" in kind) or ("7x" in kind)
    except Exception:
        return False


def _choose_tm(batch, cap=2048):
    """Batch tile: as large as possible (multiple of 16 for bf16 sublane
    packing, capped for VMEM). Only force a multi-step grid on 2-TC chips
    (v7x), and make it even there so both cores get balanced work."""
    align = 16
    tm = min(cap, _round_up(batch, align))
    if _is_megacore_chip() and batch > align:
        steps = _cdiv(batch, tm)
        if steps % 2 != 0:
            steps += 1
            tm = _round_up(_cdiv(batch, steps), align)
    return max(align, tm)


def _cif_kernel(x_ref, w1_ref, b1_ref, w2_ref, b2_ref, g_ref, beta_ref, o_ref):
    # Parameters: weights may be bf16 (MXU compute dtype); biases / LN params f32.
    w1 = w1_ref[...]
    w2 = w2_ref[...]
    b1 = b1_ref[...]
    b2 = b2_ref[...]
    g = g_ref[...]
    be = beta_ref[...]

    # x arrives in its HBM dtype; cast to the MXU compute dtype in-kernel
    # (saves a full cast+rewrite pass over the batch in the wrapper).
    x = x_ref[...].astype(w1.dtype)

    # Linear(384 -> 256) + ReLU: MXU matmul, f32 accumulate, f32 epilogue.
    h = jnp.dot(x, w1, preferred_element_type=jnp.float32) + b1
    h = jnp.maximum(h, 0.0)

    # Linear(256 -> 384): feed the MXU in the weights' compute dtype.
    y = jnp.dot(h.astype(w2.dtype), w2, preferred_element_type=jnp.float32) + b2

    # One-pass LayerNorm statistics with a cancellation guard (var >= 0).
    mean = jnp.mean(y, axis=-1, keepdims=True)
    mean_sq = jnp.mean(y * y, axis=-1, keepdims=True)
    var = jnp.maximum(mean_sq - mean * mean, 0.0)
    inv = lax.rsqrt(var + LN_EPS)
    o_ref[...] = ((y - mean) * inv * g + be).astype(o_ref.dtype)


def context_isolation_forward(x, w1, b1, w2, b2, gamma, beta, *,
                              tm=None, use_bf16=True, out_dtype=None):
    """x: (B, EMB_DIM). Returns (B, EMB_DIM) in `out_dtype` (default: x.dtype)."""
    B, D = x.shape
    assert D == EMB_DIM

    if out_dtype is None:
        out_dtype = x.dtype
    if tm is None:
        tm = _choose_tm(B)
    tm = max(16, _round_up(tm, 16))   # keep bf16 loads unmasked / vreg-aligned

    grid = (pl.cdiv(B, tm),)          # ragged last block handled by Pallas masking

    compute_dtype = jnp.bfloat16 if use_bf16 else jnp.float32
    w1c = w1.astype(compute_dtype)
    w2c = w2.astype(compute_dtype)

    # Biases / LN params as (1, N) f32 slabs (lane-dense 2-D blocks).
    b1_2d = b1.reshape(1, HID_DIM).astype(jnp.float32)
    b2_2d = b2.reshape(1, EMB_DIM).astype(jnp.float32)
    g_2d = gamma.reshape(1, EMB_DIM).astype(jnp.float32)
    be_2d = beta.reshape(1, EMB_DIM).astype(jnp.float32)

    call = pl.pallas_call(
        _cif_kernel,
        out_shape=jax.ShapeDtypeStruct((B, EMB_DIM), out_dtype),
        grid_spec=pltpu.PrefetchScalarGridSpec(
            num_scalar_prefetch=0,
            grid=grid,
            in_specs=[
                pl.BlockSpec((tm, EMB_DIM), lambda i: (i, 0)),        # x tile
                pl.BlockSpec((EMB_DIM, HID_DIM), lambda i: (0, 0)),   # W1
                pl.BlockSpec((1, HID_DIM), lambda i: (0, 0)),         # b1
                pl.BlockSpec((HID_DIM, EMB_DIM), lambda i: (0, 0)),   # W2
                pl.BlockSpec((1, EMB_DIM), lambda i: (0, 0)),         # b2
                pl.BlockSpec((1, EMB_DIM), lambda i: (0, 0)),         # gamma
                pl.BlockSpec((1, EMB_DIM), lambda i: (0, 0)),         # beta
            ],
            out_specs=pl.BlockSpec((tm, EMB_DIM), lambda i: (i, 0)),
        ),
        compiler_params=pltpu.CompilerParams(
            dimension_semantics=("parallel",)),
    )
    return call(x, w1c, b1_2d, w2c, b2_2d, g_2d, be_2d)


def reference_forward(x, w1, b1, w2, b2, gamma, beta):
    h = jnp.maximum(x @ w1 + b1, 0.0)
    y = h @ w2 + b2
    mean = jnp.mean(y, axis=-1, keepdims=True)
    var = jnp.mean((y - mean) ** 2, axis=-1, keepdims=True)
    return (y - mean) / jnp.sqrt(var + LN_EPS) * gamma + beta


if __name__ == "__main__":
    key = jax.random.PRNGKey(0)
    k_x, k_w1, k_b1, k_w2, k_b2 = jax.random.split(key, 5)

    B = 100  # small batch; not a multiple of 16 -> exercises the ragged path
    x = jax.random.normal(k_x, (B, EMB_DIM), dtype=jnp.float32)

    # Deterministic synthetic parameters (Kaiming-uniform-ish scale).
    lim1 = 1.0 / jnp.sqrt(EMB_DIM)
    lim2 = 1.0 / jnp.sqrt(HID_DIM)
    w1 = jax.random.uniform(k_w1, (EMB_DIM, HID_DIM), jnp.float32, -lim1, lim1)
    b1 = jax.random.uniform(k_b1, (HID_DIM,), jnp.float32, -lim1, lim1)
    w2 = jax.random.uniform(k_w2, (HID_DIM, EMB_DIM), jnp.float32, -lim2, lim2)
    b2 = jax.random.uniform(k_b2, (EMB_DIM,), jnp.float32, -lim2, lim2)
    gamma = jnp.ones((EMB_DIM,), jnp.float32)   # LayerNorm default init
    beta = jnp.zeros((EMB_DIM,), jnp.float32)

    ref = reference_forward(x, w1, b1, w2, b2, gamma, beta)

    # Default path: bf16 MXU inputs (cast in-kernel), f32 output (= x.dtype).
    out = jax.block_until_ready(
        context_isolation_forward(x, w1, b1, w2, b2, gamma, beta))
    assert out.shape == (B, EMB_DIM) and out.dtype == jnp.float32
    assert jnp.allclose(out, ref, atol=5e-2, rtol=5e-2), "bf16 path mismatch"

    # Explicit multi-step grid with a ragged, masked last block (B=100, tm=64).
    out_ragged = jax.block_until_ready(
        context_isolation_forward(x, w1, b1, w2, b2, gamma, beta, tm=64))
    assert jnp.allclose(out_ragged, ref, atol=5e-2, rtol=5e-2), "ragged mismatch"

    # Strict f32 MXU path (slower; for f32-exact consumers).
    out_f32 = jax.block_until_ready(
        context_isolation_forward(x, w1, b1, w2, b2, gamma, beta,
                                  use_bf16=False))
    assert jnp.allclose(out_f32, ref, atol=1e-4, rtol=1e-4), "f32 path mismatch"

    # Narrow output store (halves the dominant HBM write stream).
    out_bf16 = jax.block_until_ready(
        context_isolation_forward(x, w1, b1, w2, b2, gamma, beta,
                                  out_dtype=jnp.bfloat16))
    assert out_bf16.dtype == jnp.bfloat16
    assert jnp.allclose(out_bf16.astype(jnp.float32), ref,
                        atol=1e-1, rtol=1e-1), "bf16-output mismatch"

    print("KERNEL_OK")
</pallas_src>

<mosaic_0001>
module attributes {stable_mosaic.version = 11 : i64} {
  func.func @_cif_kernel(%arg0: i32, %arg1: memref<112x384xf32, #tpu.memory_space<vmem>>, %arg2: memref<384x256xbf16, #tpu.memory_space<vmem>>, %arg3: memref<1x256xf32, #tpu.memory_space<vmem>>, %arg4: memref<256x384xbf16, #tpu.memory_space<vmem>>, %arg5: memref<1x384xf32, #tpu.memory_space<vmem>>, %arg6: memref<1x384xf32, #tpu.memory_space<vmem>>, %arg7: memref<1x384xf32, #tpu.memory_space<vmem>>, %arg8: memref<112x384xf32, #tpu.memory_space<vmem>>) attributes {dimension_semantics = [#tpu.dimension_semantics<parallel>], iteration_bounds = array<i64: 1>, scalar_prefetch = 0 : i64, scratch_operands = 0 : i64, tpu.core_type = #tpu.core_type<tc>, window_params = [{transform_indices = @transform_0, window_bounds = array<i64: 112, 384>}, {pipeline_mode = #tpu.pipeline_mode<synchronous>, transform_indices = @transform_1, window_bounds = array<i64: 384, 256>}, {pipeline_mode = #tpu.pipeline_mode<synchronous>, transform_indices = @transform_2, window_bounds = array<i64: 1, 256>}, {pipeline_mode = #tpu.pipeline_mode<synchronous>, transform_indices = @transform_3, window_bounds = array<i64: 256, 384>}, {pipeline_mode = #tpu.pipeline_mode<synchronous>, transform_indices = @transform_4, window_bounds = array<i64: 1, 384>}, {pipeline_mode = #tpu.pipeline_mode<synchronous>, transform_indices = @transform_5, window_bounds = array<i64: 1, 384>}, {pipeline_mode = #tpu.pipeline_mode<synchronous>, transform_indices = @transform_6, window_bounds = array<i64: 1, 384>}, {transform_indices = @transform_7, window_bounds = array<i64: 112, 384>}]} {
    %c0 = arith.constant 0 : index
    %c0_0 = arith.constant 0 : index
    %0 = vector.load %arg2[%c0, %c0_0] : memref<384x256xbf16, #tpu.memory_space<vmem>>, vector<384x256xbf16>
    %c0_1 = arith.constant 0 : index
    %c0_2 = arith.constant 0 : index
    %1 = vector.load %arg4[%c0_1, %c0_2] : memref<256x384xbf16, #tpu.memory_space<vmem>>, vector<256x384xbf16>
    %c0_3 = arith.constant 0 : index
    %c0_4 = arith.constant 0 : index
    %2 = vector.load %arg3[%c0_3, %c0_4] : memref<1x256xf32, #tpu.memory_space<vmem>>, vector<1x256xf32>
    %c0_5 = arith.constant 0 : index
    %c0_6 = arith.constant 0 : index
    %3 = vector.load %arg5[%c0_5, %c0_6] : memref<1x384xf32, #tpu.memory_space<vmem>>, vector<1x384xf32>
    %c0_7 = arith.constant 0 : index
    %c0_8 = arith.constant 0 : index
    %4 = vector.load %arg6[%c0_7, %c0_8] : memref<1x384xf32, #tpu.memory_space<vmem>>, vector<1x384xf32>
    %c0_9 = arith.constant 0 : index
    %c0_10 = arith.constant 0 : index
    %5 = vector.load %arg7[%c0_9, %c0_10] : memref<1x384xf32, #tpu.memory_space<vmem>>, vector<1x384xf32>
    %c0_11 = arith.constant 0 : index
    %c0_12 = arith.constant 0 : index
    %6 = vector.load %arg1[%c0_11, %c0_12] : memref<112x384xf32, #tpu.memory_space<vmem>>, vector<112x384xf32>
    %7 = arith.truncf %6 : vector<112x384xf32> to vector<112x384xbf16>
    %cst = arith.constant dense<0.000000e+00> : vector<112x256xf32>
    %8 = tpu.matmul %7, %0, %cst {dimension_numbers = #tpu.dot_dimension_numbers<[1], [0], [0], [1], [0, 0, 1, 1], [], []>} : vector<112x384xbf16>, vector<384x256xbf16>, vector<112x256xf32> -> vector<112x256xf32>
    %9 = vector.broadcast %2 : vector<1x256xf32> to vector<112x256xf32>
    %10 = arith.addf %8, %9 : vector<112x256xf32>
    %cst_13 = arith.constant 0.000000e+00 : f32
    %11 = vector.broadcast %cst_13 : f32 to vector<112x256xf32>
    %12 = arith.maximumf %10, %11 : vector<112x256xf32>
    %13 = arith.truncf %12 : vector<112x256xf32> to vector<112x256xbf16>
    %cst_14 = arith.constant dense<0.000000e+00> : vector<112x384xf32>
    %14 = tpu.matmul %13, %1, %cst_14 {dimension_numbers = #tpu.dot_dimension_numbers<[1], [0], [0], [1], [0, 0, 1, 1], [], []>} : vector<112x256xbf16>, vector<256x384xbf16>, vector<112x384xf32> -> vector<112x384xf32>
    %15 = vector.broadcast %3 : vector<1x384xf32> to vector<112x384xf32>
    %16 = arith.addf %14, %15 : vector<112x384xf32>
    %cst_15 = arith.constant dense<0.000000e+00> : vector<112xf32>
    %17 = vector.multi_reduction <add>, %16, %cst_15 [1] : vector<112x384xf32> to vector<112xf32>
    %18 = vector.shape_cast %17 : vector<112xf32> to vector<112x1xf32>
    %cst_16 = arith.constant 3.840000e+02 : f32
    %19 = vector.broadcast %cst_16 : f32 to vector<112x1xf32>
    %20 = arith.divf %18, %19 : vector<112x1xf32>
    %21 = arith.mulf %16, %16 : vector<112x384xf32>
    %cst_17 = arith.constant dense<0.000000e+00> : vector<112xf32>
    %22 = vector.multi_reduction <add>, %21, %cst_17 [1] : vector<112x384xf32> to vector<112xf32>
    %23 = vector.shape_cast %22 : vector<112xf32> to vector<112x1xf32>
    %cst_18 = arith.constant 3.840000e+02 : f32
    %24 = vector.broadcast %cst_18 : f32 to vector<112x1xf32>
    %25 = arith.divf %23, %24 : vector<112x1xf32>
    %26 = arith.mulf %20, %20 : vector<112x1xf32>
    %27 = arith.subf %25, %26 : vector<112x1xf32>
    %cst_19 = arith.constant 0.000000e+00 : f32
    %28 = vector.broadcast %cst_19 : f32 to vector<112x1xf32>
    %29 = arith.maximumf %27, %28 : vector<112x1xf32>
    %cst_20 = arith.constant 9.99999974E-6 : f32
    %30 = vector.broadcast %cst_20 : f32 to vector<112x1xf32>
    %31 = arith.addf %29, %30 : vector<112x1xf32>
    %32 = math.rsqrt %31 : vector<112x1xf32>
    %33 = vector.broadcast %20 : vector<112x1xf32> to vector<112x384xf32>
    %34 = arith.subf %16, %33 : vector<112x384xf32>
    %35 = vector.broadcast %32 : vector<112x1xf32> to vector<112x384xf32>
    %36 = arith.mulf %34, %35 : vector<112x384xf32>
    %37 = vector.broadcast %4 : vector<1x384xf32> to vector<112x384xf32>
    %38 = arith.mulf %36, %37 : vector<112x384xf32>
    %39 = vector.broadcast %5 : vector<1x384xf32> to vector<112x384xf32>
    %40 = arith.addf %38, %39 : vector<112x384xf32>
    %c0_21 = arith.constant 0 : index
    %c0_22 = arith.constant 0 : index
    %41 = vector.load %arg8[%c0_21, %c0_22] : memref<112x384xf32, #tpu.memory_space<vmem>>, vector<112x384xf32>
    tpu.vector_store %arg8[%c0_21, %c0_22], %40 {strides = array<i32>} : memref<112x384xf32, #tpu.memory_space<vmem>>, vector<112x384xf32>,
    return
  }
  func.func @transform_0(%arg0: i32) -> (i32, i32) {
    %c0_i32 = arith.constant 0 : i32
    %c0_i32_0 = arith.constant 0 : i32
    return %arg0, %c0_i32 : i32, i32
  }
  func.func @transform_1(%arg0: i32) -> (i32, i32) {
    %c0_i32 = arith.constant 0 : i32
    %c0_i32_0 = arith.constant 0 : i32
    %c0_i32_1 = arith.constant 0 : i32
    return %c0_i32, %c0_i32_0 : i32, i32
  }
  func.func @transform_2(%arg0: i32) -> (i32, i32) {
    %c0_i32 = arith.constant 0 : i32
    %c0_i32_0 = arith.constant 0 : i32
    %c0_i32_1 = arith.constant 0 : i32
    return %c0_i32, %c0_i32_0 : i32, i32
  }
  func.func @transform_3(%arg0: i32) -> (i32, i32) {
    %c0_i32 = arith.constant 0 : i32
    %c0_i32_0 = arith.constant 0 : i32
    %c0_i32_1 = arith.constant 0 : i32
    return %c0_i32, %c0_i32_0 : i32, i32
  }
  func.func @transform_4(%arg0: i32) -> (i32, i32) {
    %c0_i32 = arith.constant 0 : i32
    %c0_i32_0 = arith.constant 0 : i32
    %c0_i32_1 = arith.constant 0 : i32
    return %c0_i32, %c0_i32_0 : i32, i32
  }
  func.func @transform_5(%arg0: i32) -> (i32, i32) {
    %c0_i32 = arith.constant 0 : i32
    %c0_i32_0 = arith.constant 0 : i32
    %c0_i32_1 = arith.constant 0 : i32
    return %c0_i32, %c0_i32_0 : i32, i32
  }
  func.func @transform_6(%arg0: i32) -> (i32, i32) {
    %c0_i32 = arith.constant 0 : i32
    %c0_i32_0 = arith.constant 0 : i32
    %c0_i32_1 = arith.constant 0 : i32
    return %c0_i32, %c0_i32_0 : i32, i32
  }
  func.func @transform_7(%arg0: i32) -> (i32, i32) {
    %c0_i32 = arith.constant 0 : i32
    %c0_i32_0 = arith.constant 0 : i32
    return %arg0, %c0_i32 : i32, i32
  }
}

</mosaic_0001>

<bundles_post_ra>
// kernel: tpu_custom_call.1
= control target key start
LH: loop header
LB: loop body
LE: loop exit
PB: predicated region body
PF: predicated region fallthrough
CT: control target
= control target key end

     0   :  { %12 = vsyncpa [#allocation3], 0  ;;  %s2918_s0 = inlined_call_operand.hbm [shape: f32[100,384], index: 0, kind: input, shape index: {}]   ;;  %s2919_s1 = inlined_call_operand.hbm [shape: bf16[384,256], index: 1, kind: input, shape index: {}]   ;;  %s2920_s2 = inlined_call_operand.hbm [shape: f32[1,256], index: 2, kind: input, shape index: {}]   ;;  %s2921_s3 = inlined_call_operand.hbm [shape: bf16[256,384], index: 3, kind: input, shape index: {}]   ;;  %s2922_s4 = inlined_call_operand.vmem [shape: f32[1,384], index: 4, kind: input, shape index: {}]   ;;  %s2923_s5 = inlined_call_operand.vmem [shape: f32[1,384], index: 5, kind: input, shape index: {}]   ;;  %s2924_s6 = inlined_call_operand.vmem [shape: f32[1,384], index: 6, kind: input, shape index: {}]   ;;  %s2925_s7 = inlined_call_operand.hbm [shape: f32[100,384], index: 7, kind: output, shape index: {}]  }
   0x1   :  { %13 = vsyncpa [#allocation6], 0 }
   0x2   :  { %14 = vsyncpa [#allocation9], 0 }
   0x3   :  { %15 = vsyncpa [#allocation4], 0 }
   0x4   :  { %20 = vsyncadd [#allocation3], 384  ;;  %s2191_s24 = smov [#allocation5]  }
   0x5   :  { %s33_s25 = sshll.u32 %s2191_s24, 4  ;;  %s34_s25 = int_to_ptr.vmem [resolvable:$true] %s33_s25 }
   0x6   :  { %s2091_s26 = scalar_lea.vmem %s34_s25, 6144  ;;  %p2096_p1 = scmp.lt.s32.totalorder %s34_s25, %s34_s25 }
   0x7   :  { %p2092_p0 = scmp.ne.s32.totalorder %s34_s25, %s2091_s26  ;;  %p2097_p2 = scmp.lt.s32.totalorder %s2091_s26, %s2091_s26 }
   0x9   :  { %p2098_p3 = por %p2097_p2, %p2096_p1 }
   0xb   :  { %p2099_p4 = pnand %p2098_p3, %p2092_p0 }
   0xd   :  { %2102 = shalt.err (!%p2099_p4)
}
   0xe   :  { %s2192_s27 = smov 128   ;;  %s2193_s28 = smov 8  }
   0xf   :  { %39 = dma.hbm_to_vmem [thread:$0]  %s2919_s1, 6144, %s34_s25, [#allocation6], %s2192_s27, %s2192_s27, %s2193_s28  }
  0x10   :  { %s2194_s8 = smov [#allocation2]  }
  0x11   :  { %s21_s9 = sshll.u32 %s2194_s8, 4  ;;  %s22_s9 = int_to_ptr.vmem [resolvable:$true] %s21_s9 }
  0x12   :  { %s2111_s10 = scalar_lea.vmem %s22_s9, 4992  ;;  %s2115_s11 = scalar_lea.vmem %s22_s9, 5376 }
  0x13   :  { %p2112_p5 = scmp.ne.s32.totalorder %s22_s9, %s2111_s10  ;;  %p2116_p6 = scmp.lt.s32.totalorder %s22_s9, %s22_s9 }
  0x14   :  { %p2117_p7 = scmp.lt.s32.totalorder %s2115_s11, %s2111_s10 }
  0x16   :  { %p2118_p8 = por %p2117_p7, %p2116_p6 }
  0x18   :  { %p2119_p9 = pnand %p2118_p8, %p2112_p5 }
  0x1a   :  { %2122 = shalt.err (!%p2119_p9)
}
  0x1b   :  { %s2195_s12 = smov 384   ;;  %s2196_s13 = smov 24  }
  0x1c   :  { %27 = dma.hbm_to_vmem [thread:$0]  %s2918_s0, 4992, %s22_s9, [#allocation3], %s2195_s12, %s2195_s12, %s2196_s13  }
  0x1d   :  { %s2197_s1 = smov [#allocation7]   ;;  %s2198_s17 = smov [#allocation8]  }
  0x1e   :  { %s46_s16 = sshll.u32 %s2197_s1, 4  ;;  %s55_s18 = sshll.u32 %s2198_s17, 4  ;;  %s47_s16 = int_to_ptr.vmem [resolvable:$true] %s46_s16  ;;  %s56_s18 = int_to_ptr.vmem [resolvable:$true] %s55_s18 }
  0x1f   :  { %s2131_s19 = scalar_lea.vmem %s47_s16, 32  ;;  %p2136_p11 = scmp.lt.s32.totalorder %s47_s16, %s47_s16 }
  0x20   :  { %p2132_p10 = scmp.ne.s32.totalorder %s47_s16, %s2131_s19  ;;  %p2137_p12 = scmp.lt.s32.totalorder %s2131_s19, %s2131_s19 }
  0x22   :  { %p2138_p13 = por %p2137_p12, %p2136_p11 }
  0x24   :  { %p2139_p0 = pnand %p2138_p13, %p2132_p10 }
  0x26   :  { %2142 = shalt.err (!%p2139_p0)
}
  0x27   :  { %49 = dma.hbm_to_vmem [thread:$0]  %s2920_s2, 32, %s47_s16, [#allocation6]  }
  0x28   :  { %s2151_s22 = scalar_lea.vmem %s56_s18, 6144  ;;  %p2156_p2 = scmp.lt.s32.totalorder %s56_s18, %s56_s18 }
  0x29   :  { %p2152_p1 = scmp.ne.s32.totalorder %s56_s18, %s2151_s22  ;;  %p2157_p3 = scmp.lt.s32.totalorder %s2151_s22, %s2151_s22 }
  0x2b   :  { %p2158_p4 = por %p2157_p3, %p2156_p2 }
  0x2d   :  { %p2159_p5 = pnand %p2158_p4, %p2152_p1 }
  0x2f   :  { %2162 = shalt.err (!%p2159_p5)
}
  0x30   :  { %s2199_s0 = smov 192   ;;  %s2200_s23 = smov 12  }
  0x31   :  { %61 = dma.hbm_to_vmem [thread:$0]  %s2921_s3, 6144, %s56_s18, [#allocation9], %s2199_s0, %s2199_s0, %s2200_s23  }
  0x32   :  { %2183 = dma.done.wait [#allocation3], 5376  }
  0x33   :  { %2184 = vsyncadd [#allocation3], 4294961920 }
  0x34   :  { %2185 = dma.done.wait [#allocation6], 6176  }
  0x35   :  { %2186 = vsyncadd [#allocation6], 4294961120 }
  0x36   :  { %2187 = dma.done.wait [#allocation9], 6144  }
  0x37   :  { %2188 = vsyncadd [#allocation9], 4294961152  ;;  %v2201_v0 = vmov 0   ;;  %v1919_v1 = vld [vmem:[#allocation5 + $0x74] ss:$8 sps:$4 sm:$0xff]   ;;  %v199_v41 = vld [vmem:[#allocation2 + $0x10] sm:$0xff] }
  0x38   :  { %646 = vmatprep.mubr.bf16.mxu1 %v2201_v0  ;;  %v1921_v2 = vld [vmem:[#allocation5 + $0x70] ss:$8 sps:$4 sm:$0xff]   ;;  %511 = vmatprep.subr.bf16.mxu0 %v1919_v1  ;;  %v1922_v3 = vld [vmem:[#allocation5 + $0x64] ss:$8 sps:$4 sm:$0xff]   ;;  %v1924_v4 = vld [vmem:[#allocation5 + $0x60] ss:$8 sps:$4 sm:$0xff]  }
  0x39   :  { %512 = vmatpush1.bf16.msra.mxu0 %v1921_v2  ;;  %v1925_v5 = vld [vmem:[#allocation5 + $0x54] ss:$8 sps:$4 sm:$0xff]   ;;  %v1927_v6 = vld [vmem:[#allocation5 + $0x50] ss:$8 sps:$4 sm:$0xff]   ;;  %v1928_v7 = vld [vmem:[#allocation5 + $0x44] ss:$8 sps:$4 sm:$0xff]  }
  0x3a   :  { %513 = vmatprep.subr.bf16.mxu0 %v1922_v3  ;;  %v1930_v8 = vld [vmem:[#allocation5 + $0x40] ss:$8 sps:$4 sm:$0xff]   ;;  %v1942_v9 = vld [vmem:[#allocation5 + $0x174] ss:$8 sps:$4 sm:$0xff]   ;;  %v1945_v10 = vld [vmem:[#allocation5 + $0x170] ss:$8 sps:$4 sm:$0xff]  }
  0x3b   :  { %v1931_v11 = vld [vmem:[#allocation5 + $0x34] ss:$8 sps:$4 sm:$0xff]   ;;  %614 = vmatprep.subr.bf16.mxu1 %v1942_v9  ;;  %v1948_v12 = vld [vmem:[#allocation5 + $0x164] ss:$8 sps:$4 sm:$0xff]   ;;  %v1951_v13 = vld [vmem:[#allocation5 + $0x160] ss:$8 sps:$4 sm:$0xff]  }
  0x3c   :  { %615 = vmatpush1.bf16.msra.mxu1 %v1945_v10  ;;  %v1933_v14 = vld [vmem:[#allocation5 + $0x30] ss:$8 sps:$4 sm:$0xff]   ;;  %v1934_v15 = vld [vmem:[#allocation5 + $0x24] ss:$8 sps:$4 sm:$0xff]   ;;  %v1954_v16 = vld [vmem:[#allocation5 + $0x154] ss:$8 sps:$4 sm:$0xff]  }
  0x3d   :  { %514 = vmatpush1.bf16.msra.mxu0 %v1924_v4  ;;  %616 = vmatprep.subr.bf16.mxu1 %v1948_v12  ;;  %v1957_v17 = vld [vmem:[#allocation5 + $0x150] ss:$8 sps:$4 sm:$0xff]   ;;  %v1936_v18 = vld [vmem:[#allocation5 + $0x20] ss:$8 sps:$4 sm:$0xff]   ;;  %v1960_v19 = vld [vmem:[#allocation5 + $0x144] ss:$8 sps:$4 sm:$0xff]  }
  0x3e   :  { %515 = vmatprep.subr.bf16.mxu0 %v1925_v5  ;;  %v1937_v20 = vld [vmem:[#allocation5 + $0x14] ss:$8 sps:$4 sm:$0xff]   ;;  %v1939_v21 = vld [vmem:[#allocation5 + $0x10] ss:$8 sps:$4 sm:$0xff]   ;;  %v1963_v22 = vld [vmem:[#allocation5 + $0x140] ss:$8 sps:$4 sm:$0xff]  }
  0x3f   :  { %v1966_v23 = vld [vmem:[#allocation5 + $0x134] ss:$8 sps:$4 sm:$0xff]   ;;  %v1940_v24 = vld [vmem:[#allocation5 + $0x4] ss:$8 sps:$4 sm:$0xff]   ;;  %v1969_v25 = vld [vmem:[#allocation5 + $0x130] ss:$8 sps:$4 sm:$0xff]  }
  0x40   :  { %617 = vmatpush1.bf16.msra.mxu1 %v1951_v13  ;;  %v1944_v26 = vld [vmem:[#allocation5] ss:$8 sps:$4 sm:$0xff]   ;;  %v1972_v27 = vld [vmem:[#allocation5 + $0x124] ss:$8 sps:$4 sm:$0xff]   ;;  %v1946_v28 = vld [vmem:[#allocation5 + $0xf4] ss:$8 sps:$4 sm:$0xff]  }
  0x41   :  { %516 = vmatpush1.bf16.msra.mxu0 %v1927_v6  ;;  %618 = vmatprep.subr.bf16.mxu1 %v1954_v16  ;;  %v1975_v29 = vld [vmem:[#allocation5 + $0x120] ss:$8 sps:$4 sm:$0xff]   ;;  %v1950_v30 = vld [vmem:[#allocation5 + $0xf0] ss:$8 sps:$4 sm:$0xff]   ;;  %v1978_v31 = vld [vmem:[#allocation5 + $0x114] ss:$8 sps:$4 sm:$0xff]  }
  0x42   :  { %517 = vmatprep.subr.bf16.mxu0 %v1928_v7  ;;  %v1952_v32 = vld [vmem:[#allocation5 + $0xe4] ss:$8 sps:$4 sm:$0xff]   ;;  %v198_v33 = vld [vmem:[#allocation2 + $0x8] sm:$0xff]  ;;  %v201_v34 = vld [vmem:[#allocation2 + $0x20] sm:$0xff] }
  0x43   :  { %v1981_v35 = vld [vmem:[#allocation5 + $0x110] ss:$8 sps:$4 sm:$0xff]   ;;  %v240_v36 = vpack.c.bf16 %v201_v34, %v198_v33  ;;  %v1956_v37 = vld [vmem:[#allocation5 + $0xe0] ss:$8 sps:$4 sm:$0xff]   ;;  %v1984_v38 = vld [vmem:[#allocation5 + $0x104] ss:$8 sps:$4 sm:$0xff]  }
  0x44   :  { %619 = vmatpush1.bf16.msra.mxu1 %v1957_v17  ;;  %v1958_v39 = vld [vmem:[#allocation5 + $0xd4] ss:$8 sps:$4 sm:$0xff]   ;;  %v1987_v40 = vld [vmem:[#allocation5 + $0x100] ss:$8 sps:$4 sm:$0xff]   ;;  %v1962_v43 = vld [vmem:[#allocation5 + $0xd0] ss:$8 sps:$4 sm:$0xff]  }
  0x45   :  { %518 = vmatpush1.bf16.msra.mxu0 %v1930_v8  ;;  %620 = vmatprep.subr.bf16.mxu1 %v1960_v19  ;;  %v202_v42 = vld [vmem:[#allocation2 + $0x28] sm:$0xff]  ;;  %v1964_v44 = vld [vmem:[#allocation5 + $0xc4] ss:$8 sps:$4 sm:$0xff]   ;;  %v1968_v46 = vld [vmem:[#allocation5 + $0xc0] ss:$8 sps:$4 sm:$0xff]  }
  0x46   :  { %519 = vmatprep.subr.bf16.mxu0 %v1931_v11  ;;  %543 = vmatprep.mubr.bf16.mxu0 %v240_v36  ;;  %v241_v45 = vpack.c.bf16 %v202_v42, %v199_v41  ;;  %v1970_v47 = vld [vmem:[#allocation5 + $0xb4] ss:$8 sps:$4 sm:$0xff]   ;;  %v1974_v48 = vld [vmem:[#allocation5 + $0xb0] ss:$8 sps:$4 sm:$0xff]   ;;  %v208_v50 = vld [vmem:[#allocation2 + $0x58] sm:$0xff] }
  0x47   :  { %v205_v49 = vld [vmem:[#allocation2 + $0x40] sm:$0xff]  ;;  %v1976_v53 = vld [vmem:[#allocation5 + $0xa4] ss:$8 sps:$4 sm:$0xff]   ;;  %v1980_v55 = vld [vmem:[#allocation5 + $0xa0] ss:$8 sps:$4 sm:$0xff]  }
  0x48   :  { %621 = vmatpush1.bf16.msra.mxu1 %v1963_v22  ;;  %v1991_v51 = vld [vmem:[#allocation8 + $0xa8] ss:$12 sps:$4 sm:$0xff]   ;;  %v1993_v52 = vld [vmem:[#allocation8 + $0xac] ss:$12 sps:$4 sm:$0xff]   ;;  %v244_v56 = vpack.c.bf16 %v208_v50, %v205_v49  ;;  %v1994_v57 = vld [vmem:[#allocation8 + $0x90] ss:$12 sps:$4 sm:$0xff]  }
  0x49   :  { %520 = vmatpush1.bf16.msra.mxu0 %v1933_v14  ;;  %622 = vmatprep.subr.bf16.mxu1 %v1966_v23  ;;  %v1996_v54 = vld [vmem:[#allocation8 + $0x94] ss:$12 sps:$4 sm:$0xff]   ;;  %v1999_v58 = vld [vmem:[#allocation8 + $0x7c] ss:$12 sps:$4 sm:$0xff]   ;;  %v1997_v62 = vld [vmem:[#allocation8 + $0x78] ss:$12 sps:$4 sm:$0xff]  }
  0x4a   :  { %521 = vmatprep.subr.bf16.mxu0 %v1934_v15  ;;  %v1982_v59 = vld [vmem:[#allocation5 + $0x94] ss:$8 sps:$4 sm:$0xff]   ;;  %v211_v60 = vld [vmem:[#allocation2 + $0x70] sm:$0xff]  ;;  %v1986_v63 = vld [vmem:[#allocation5 + $0x90] ss:$8 sps:$4 sm:$0xff]  }
  0x4b   :  { %v214_v61 = vld [vmem:[#allocation2 + $0x88] sm:$0xff]  ;;  %v2002_v1 = vld [vmem:[#allocation8 + $0x64] ss:$12 sps:$4 sm:$0xff]   ;;  %v2000_v9 = vld [vmem:[#allocation8 + $0x60] ss:$12 sps:$4 sm:$0xff]  }
  0x4c   :  { %623 = vmatpush1.bf16.msra.mxu1 %v1969_v25  ;;  %v1988_v2 = vld [vmem:[#allocation5 + $0x84] ss:$8 sps:$4 sm:$0xff]   ;;  %v1990_v3 = vld [vmem:[#allocation5 + $0x80] ss:$8 sps:$4 sm:$0xff]   ;;  %v197_v4 = vld [vmem:[#allocation2] sm:$0xff]  ;;  %v247_v6 = vpack.c.bf16 %v214_v61, %v211_v60 }
  0x4d   :  { %522 = vmatpush1.bf16.msra.mxu0 %v1936_v18  ;;  %624 = vmatprep.subr.bf16.mxu1 %v1972_v27  ;;  %v200_v5 = vld [vmem:[#allocation2 + $0x18] sm:$0xff]  ;;  %v207_v8 = vld [vmem:[#allocation2 + $0x50] sm:$0xff]  ;;  %v217_v11 = vld [vmem:[#allocation2 + $0xa0] sm:$0xff] }
  0x4e   :  { %523 = vmatprep.subr.bf16.mxu0 %v1937_v20  ;;  %v204_v7 = vld [vmem:[#allocation2 + $0x38] sm:$0xff]  ;;  %v2261_v12 = vld [vmem:[#allocation8 + $0x170] ss:$12 sps:$4 sm:$0xff]   ;;  %v239_v14 = vpack.c.bf16 %v200_v5, %v197_v4  ;;  %v2010_v18 = vld [vmem:[#allocation8 + $0x34] ss:$12 sps:$4 sm:$0xff]  }
  0x4f   :  { %v2007_v10 = vld [vmem:[#allocation8 + $0x4c] ss:$12 sps:$4 sm:$0xff]   ;;  %v2005_v15 = vld [vmem:[#allocation8 + $0x48] ss:$12 sps:$4 sm:$0xff]   ;;  %v243_v16 = vpack.c.bf16 %v207_v8, %v204_v7  ;;  %v2264_v17 = vld [vmem:[#allocation8 + $0xb0] ss:$12 sps:$4 sm:$0xff]  }
  0x50   :  { %625 = vmatpush1.bf16.msra.mxu1 %v1975_v29  ;;  %v220_v13 = vld [vmem:[#allocation2 + $0xb8] sm:$0xff]  ;;  %v203_v20 = vld [vmem:[#allocation2 + $0x30] sm:$0xff]  ;;  %v213_v25 = vld [vmem:[#allocation2 + $0x80] sm:$0xff] }
  0x51   :  { %524 = vmatpush1.bf16.msra.mxu0 %v1939_v21  ;;  %626 = vmatprep.subr.bf16.mxu1 %v1978_v31  ;;  %v2267_v19 = vld [vmem:[#allocation8 + $0x158] ss:$12 sps:$4 sm:$0xff]   ;;  %v250_v22 = vpack.c.bf16 %v220_v13, %v217_v11  ;;  %v2008_v23 = vld [vmem:[#allocation8 + $0x30] ss:$12 sps:$4 sm:$0xff]   ;;  %v2279_v36 = vld [vmem:[#allocation8 + $0x128] ss:$12 sps:$4 sm:$0xff]  }
  0x52   :  { %525 = vmatprep.subr.bf16.mxu0 %v1940_v24  ;;  %v206_v21 = vld [vmem:[#allocation2 + $0x48] sm:$0xff]  ;;  %v2018_v33 = vld [vmem:[#allocation8 + $0x4] ss:$12 sps:$4 sm:$0xff]   ;;  %v2034_v4 = vld [vmem:[#allocation8 + $0x120] ss:$12 sps:$4 sm:$0xff]  }
  0x53   :  { %v210_v24 = vld [vmem:[#allocation2 + $0x68] sm:$0xff]  ;;  %v216_v42 = vld [vmem:[#allocation2 + $0x98] sm:$0xff]  ;;  %v235_v61 = vld [vmem:[#allocation2 + $0x130] sm:$0xff] }
  0x54   :  { %627 = vmatpush1.bf16.msra.mxu1 %v1981_v35  ;;  %v2015_v27 = vld [vmem:[#allocation8 + $0x1c] ss:$12 sps:$4 sm:$0xff]   ;;  %v2013_v31 = vld [vmem:[#allocation8 + $0x18] ss:$12 sps:$4 sm:$0xff]   ;;  %v246_v34 = vpack.c.bf16 %v213_v25, %v210_v24  ;;  %v2277_v35 = vld [vmem:[#allocation8 + $0x80] ss:$12 sps:$4 sm:$0xff]  }
  0x55   :  { %526 = vmatpush1.bf16.msra.mxu0 %v1944_v26  ;;  %628 = vmatprep.subr.bf16.mxu1 %v1984_v38  ;;  %v2269_v26 = vld [vmem:[#allocation8 + $0x98] ss:$12 sps:$4 sm:$0xff]   ;;  %v209_v38 = vld [vmem:[#allocation2 + $0x60] sm:$0xff] }
  0x56   :  { %527 = vmatprep.subr.bf16.mxu0 %v1946_v28  ;;  %v223_v28 = vld [vmem:[#allocation2 + $0xd0] sm:$0xff]  ;;  %v226_v29 = vld [vmem:[#allocation2 + $0xe8] sm:$0xff]  ;;  %v221_v5 = vld [vmem:[#allocation2 + $0xc0] sm:$0xff] }
  0x57   :  { %v2023_v41 = vld [vmem:[#allocation8 + $0x16c] ss:$12 sps:$4 sm:$0xff]   ;;  %v2021_v49 = vld [vmem:[#allocation8 + $0x168] ss:$12 sps:$4 sm:$0xff]   ;;  %v231_v8 = vld [vmem:[#allocation2 + $0x110] sm:$0xff] }
  0x58   :  { %629 = vmatpush1.bf16.msra.mxu1 %v1987_v40  ;;  %v253_v40 = vpack.c.bf16 %v226_v29, %v223_v28  ;;  %v228_v7 = vld [vmem:[#allocation2 + $0xf8] sm:$0xff]  ;;  %v230_v11 = vld [vmem:[#allocation2 + $0x108] sm:$0xff] }
  0x59   :  { %528 = vmatpush2.bf16.msra.mxu0 %v1950_v30  ;;  %1031 = vmatprep.subr.bf16.mxu1 %v1993_v52  ;;  %v2273_v30 = vld [vmem:[#allocation8 + $0x140] ss:$12 sps:$4 sm:$0xff]   ;;  %v2290_v52 = vld [vmem:[#allocation8 + $0x50] ss:$12 sps:$4 sm:$0xff]   ;;  %v2295_v24 = vld [vmem:[#allocation8 + $0xf8] ss:$12 sps:$4 sm:$0xff]  }
  0x5a   :  { %529 = vmatprep.subr.bf16.mxu0 %v1952_v32  ;;  %v242_v32 = vpack.c.bf16 %v206_v21, %v203_v20  ;;  %v234_v13 = vld [vmem:[#allocation2 + $0x128] sm:$0xff]  ;;  %v236_v20 = vld [vmem:[#allocation2 + $0x138] sm:$0xff] }
  0x5b   :  { %647 = vmatmul.mubr.bf16.vlgmr.msra.gmra.mxu1 %v241_v45  ;;  %v2284_v45 = vld [vmem:[#allocation8 + $0x110] ss:$12 sps:$4 sm:$0xff]   ;;  %v2044_v25 = vld [vmem:[#allocation8 + $0xf4] ss:$12 sps:$4 sm:$0xff]  }
  0x5c   :  { %656 = vmatprep.mubr.bf16.mxu1 %v2201_v0  ;;  %1032 = vmatpush1.bf16.msra.mxu1 %v1991_v51  ;;  %v2027_v51 = vld [vmem:[#allocation8 + $0x154] ss:$12 sps:$4 sm:$0xff]   ;;  %v2042_v28 = vld [vmem:[#allocation8 + $0xf0] ss:$12 sps:$4 sm:$0xff]  }
  0x5d   :  { %530 = vmatpush2.bf16.msra.mxu0 %v1956_v37  ;;  %1033 = vmatprep.subr.bf16.mxu1 %v1996_v54  ;;  %v2016_v37 = vld [vmem:[#allocation8] ss:$12 sps:$4 sm:$0xff]   ;;  %v2025_v54 = vld [vmem:[#allocation8 + $0x150] ss:$12 sps:$4 sm:$0xff]  }
  0x5e   :  { %531 = vmatprep.subr.bf16.mxu0 %v1958_v39  ;;  %v212_v39 = vld [vmem:[#allocation2 + $0x78] sm:$0xff] }
  0x5f   :  { %v2047_v29 = vld [vmem:[#allocation8 + $0xdc] ss:$12 sps:$4 sm:$0xff]  }
  0x60   :  { %1034 = vmatpush1.bf16.msra.mxu1 %v1994_v57  ;;  %v2031_v57 = vld [vmem:[#allocation8 + $0x13c] ss:$12 sps:$4 sm:$0xff]  }
  0x61   :  { %532 = vmatpush2.bf16.msra.mxu0 %v1962_v43  ;;  %1035 = vmatprep.subr.bf16.mxu1 %v1999_v58  ;;  %v219_v43 = vld [vmem:[#allocation2 + $0xb0] sm:$0xff]  ;;  %v222_v58 = vld [vmem:[#allocation2 + $0xc8] sm:$0xff] }
  0x62   :  { %533 = vmatprep.subr.bf16.mxu0 %v1964_v44  ;;  %v2282_v44 = vld [vmem:[#allocation8 + $0x68] ss:$12 sps:$4 sm:$0xff]   ;;  %v249_v50 = vpack.c.bf16 %v219_v43, %v216_v42 }
  0x63   :  { %657 = vmatmul.mubr.bf16.gmra.mxu1 %v244_v56  ;;  %v218_v56 = vld [vmem:[#allocation2 + $0xa8] sm:$0xff] }
  0x64   :  { %666 = vmatprep.mubr.bf16.mxu1 %v2201_v0  ;;  %1036 = vmatpush1.bf16.msra.mxu1 %v1997_v62  ;;  %v238_v62 = vld [vmem:[#allocation2 + $0x148] sm:$0xff] }
  0x65   :  { %534 = vmatpush2.bf16.msra.mxu0 %v1968_v46  ;;  %1037 = vmatprep.subr.bf16.mxu1 %v2002_v1  ;;  %v229_v46 = vld [vmem:[#allocation2 + $0x100] sm:$0xff] }
  0x66   :  { %535 = vmatprep.subr.bf16.mxu0 %v1970_v47  ;;  %v232_v47 = vld [vmem:[#allocation2 + $0x118] sm:$0xff] }
  0x68   :  { %1038 = vmatpush1.bf16.msra.mxu1 %v2000_v9 }
  0x69   :  { %536 = vmatpush2.bf16.msra.mxu0 %v1974_v48  ;;  %1039 = vmatprep.subr.bf16.mxu1 %v2007_v10  ;;  %v245_v48 = vpack.c.bf16 %v212_v39, %v209_v38  ;;  %v227_v10 = vld [vmem:[#allocation2 + $0xf0] sm:$0xff]  ;;  %v2309_v39 = vld [vmem:[#allocation8 + $0x8] ss:$12 sps:$4 sm:$0xff]  }
  0x6a   :  { %537 = vmatprep.subr.bf16.mxu0 %v1976_v53  ;;  %v256_v53 = vpack.c.bf16 %v232_v47, %v229_v46  ;;  %v2050_v38 = vld [vmem:[#allocation8 + $0xc0] ss:$12 sps:$4 sm:$0xff]   ;;  %v261_v47 = vlaneseq }
  0x6b   :  { %667 = vmatmul.mubr.bf16.gmra.mxu1 %v247_v6  ;;  %v224_v6 = vld [vmem:[#allocation2 + $0xd8] sm:$0xff] }
  0x6c   :  { %676 = vmatprep.mubr.bf16.mxu1 %v2201_v0  ;;  %1040 = vmatpush1.bf16.msra.mxu1 %v2005_v15  ;;  %v251_v9 = vpack.c.bf16 %v224_v6, %v221_v5  ;;  %v254_v15 = vpack.c.bf16 %v230_v11, %v227_v10 }
  0x6d   :  { %538 = vmatpush2.bf16.msra.mxu0 %v1980_v55  ;;  %1041 = vmatprep.subr.bf16.mxu1 %v2010_v18  ;;  %v215_v55 = vld [vmem:[#allocation2 + $0x90] sm:$0xff]  ;;  %v233_v18 = vld [vmem:[#allocation2 + $0x120] sm:$0xff] }
  0x6e   :  { %539 = vmatprep.subr.bf16.mxu0 %v1982_v59  ;;  %v225_v59 = vld [vmem:[#allocation2 + $0xe0] sm:$0xff]  ;;  %v248_v60 = vpack.c.bf16 %v218_v56, %v215_v55  ;;  %v257_v21 = vpack.c.bf16 %v236_v20, %v233_v18 }
  0x6f   :  { %v252_v1 = vpack.c.bf16 %v225_v59, %v222_v58 }
  0x70   :  { %1042 = vmatpush1.bf16.msra.mxu1 %v2008_v23  ;;  %v2039_v23 = vld [vmem:[#allocation8 + $0x10c] ss:$12 sps:$4 sm:$0xff]  }
  0x71   :  { %540 = vmatpush2.bf16.msra.mxu0 %v1986_v63  ;;  %1043 = vmatprep.subr.bf16.mxu1 %v2015_v27  ;;  %v2029_v63 = vld [vmem:[#allocation8 + $0x138] ss:$12 sps:$4 sm:$0xff]  }
  0x72   :  { %541 = vmatprep.subr.bf16.mxu0 %v1988_v2  ;;  %v2036_v2 = vld [vmem:[#allocation8 + $0x124] ss:$12 sps:$4 sm:$0xff]  }
  0x73   :  { %677 = vmatmul.mubr.bf16.gmra.mxu1 %v250_v22  ;;  %v2037_v22 = vld [vmem:[#allocation8 + $0x108] ss:$12 sps:$4 sm:$0xff]   ;;  %v2297_v27 = vld [vmem:[#allocation8 + $0x38] ss:$12 sps:$4 sm:$0xff]  }
  0x74   :  { %686 = vmatprep.mubr.bf16.mxu1 %v2201_v0  ;;  %1044 = vmatpush1.bf16.msra.mxu1 %v2013_v31  ;;  %v2301_v31 = vld [vmem:[#allocation8 + $0xe0] ss:$12 sps:$4 sm:$0xff]  }
  0x75   :  { %542 = vmatpush2.bf16.msra.mxu0 %v1990_v3  ;;  %1045 = vmatprep.subr.bf16.mxu1 %v2018_v33  ;;  %v259_v3 = vpack.c.bf16 %v238_v62, %v235_v61  ;;  %v2303_v33 = vld [vmem:[#allocation8 + $0x20] ss:$12 sps:$4 sm:$0xff]  }
  0x76   :  { %1833 = vmatprep.subr.bf16.mxu0 %v2261_v12 }
  0x78   :  { %544 = vmatmul.mubr.bf16.vlgmr.msra.gmra.mxu0 %v239_v14  ;;  %1046 = vmatpush1.bf16.msra.mxu1 %v2016_v37  ;;  %v237_v14 = vld [vmem:[#allocation2 + $0x140] sm:$0xff] }
  0x79   :  { %553 = vmatprep.mubr.bf16.mxu0 %v243_v16  ;;  %1834 = vmatpush3.bf16.msra.mxu0 %v2264_v17  ;;  %v258_v16 = vpack.c.bf16 %v237_v14, %v234_v13  ;;  %v2307_v37 = vld [vmem:[#allocation8 + $0xc8] ss:$12 sps:$4 sm:$0xff]  }
  0x7a   :  { %1835 = vmatprep.subr.bf16.mxu0 %v2267_v19  ;;  %1047 = vmatprep.subr.bf16.mxu1 %v2023_v41 }
  0x7b   :  { %687 = vmatmul.mubr.bf16.gmra.mxu1 %v253_v40 }
  0x7c   :  { %696 = vmatprep.mubr.bf16.mxu1 %v2201_v0  ;;  %1048 = vmatpush2.bf16.msra.mxu1 %v2021_v49 }
  0x7d   :  { %1836 = vmatpush3.bf16.msra.mxu0 %v2269_v26  ;;  %1049 = vmatprep.subr.bf16.mxu1 %v2027_v51 }
  0x7e   :  { %1837 = vmatprep.subr.bf16.mxu0 %v2273_v30 }
  0x80   :  { %554 = vmatmul.mubr.bf16.gmra.mxu0 %v242_v32  ;;  %1050 = vmatpush2.bf16.msra.mxu1 %v2025_v54  ;;  %v2045_v32 = vld [vmem:[#allocation8 + $0xd8] ss:$12 sps:$4 sm:$0xff]  }
  0x81   :  { %563 = vmatprep.mubr.bf16.mxu0 %v246_v34  ;;  %1838 = vmatpush3.bf16.msra.mxu0 %v2277_v35  ;;  %v2052_v34 = vld [vmem:[#allocation8 + $0xc4] ss:$12 sps:$4 sm:$0xff]  }
  0x82   :  { %1839 = vmatprep.subr.bf16.mxu0 %v2279_v36  ;;  %1051 = vmatprep.subr.bf16.mxu1 %v2031_v57 }
  0x83   :  { %697 = vmatmul.mubr.bf16.gmra.mxu1 %v256_v53 }
  0x84   :  { %706 = vmatprep.mubr.bf16.mxu1 %v2201_v0  ;;  %1052 = vmatpush2.bf16.msra.mxu1 %v2029_v63  ;;  %v255_v0 = vpack.c.bf16 %v231_v8, %v228_v7 }
  0x85   :  { %1840 = vmatpush3.bf16.msra.mxu0 %v2282_v44  ;;  %1053 = vmatprep.subr.bf16.mxu1 %v2036_v2 }
  0x86   :  { %1841 = vmatprep.subr.bf16.mxu0 %v2284_v45 }
  0x88   :  { %564 = vmatmul.mubr.bf16.gmra.mxu0 %v245_v48  ;;  %1054 = vmatpush2.bf16.msra.mxu1 %v2034_v4 }
  0x89   :  { %573 = vmatprep.mubr.bf16.mxu0 %v249_v50  ;;  %1842 = vmatpush3.bf16.msra.mxu0 %v2290_v52  ;;  %v2314_v50 = vshrl.u32 %v261_v47, 7 }
  0x8a   :  { %1055 = vmatprep.subr.bf16.mxu1 %v2039_v23  ;;  %1843 = vmatprep.subr.bf16.mxu0 %v2295_v24 }
  0x8b   :  { %707 = vmatmul.mubr.bf16.gmra.mxu1 %v259_v3  ;;  %v2317_v53 = vsub.s32 1, %v2314_v50  ;;  %v2322_v55 = vsub.s32 0, %v2314_v50 }
  0x8c   :  { %1056 = vmatpush2.bf16.msra.mxu1 %v2037_v22 }
  0x8d   :  { %1057 = vmatprep.subr.bf16.mxu1 %v2044_v25  ;;  %1844 = vmatpush3.bf16.msra.mxu0 %v2297_v27 }
  0x8e   :  { %1845 = vmatprep.subr.bf16.mxu0 %v2301_v31 }
  0x90   :  { %574 = vmatmul.mubr.bf16.gmra.mxu0 %v248_v60  ;;  %1058 = vmatpush2.bf16.msra.mxu1 %v2042_v28 }
  0x91   :  { %583 = vmatprep.mubr.bf16.mxu0 %v252_v1  ;;  %1059 = vmatprep.subr.bf16.mxu1 %v2047_v29 }
  0x92   :  { %1846 = vmatpush3.bf16.msra.mxu0 %v2303_v33 }
  0x93   :  { %1847 = vmatprep.subr.bf16.mxu0 %v2307_v37 }
  0x94   :  { %1060 = vmatpush2.bf16.msra.mxu1 %v2045_v32 }
  0x95   :  { %1061 = vmatprep.subr.bf16.mxu1 %v2052_v34 }
  0x96   :  { %1848 = vmatpush3.bf16.msra.mxu0 %v2309_v39 }
  0x98   :  { %584 = vmatmul.mubr.bf16.gmra.mxu0 %v251_v9  ;;  %1062 = vmatpush2.bf16.msra.mxu1 %v2050_v38 }
  0x99   :  { %593 = vmatprep.mubr.bf16.mxu0 %v255_v0  ;;  %1891 = vmatprep.subr.bf16.mxu1 %v2261_v12  ;;  %v193_v12 = vld [vmem:[#allocation7] sm:$0x3] }
  0x9a   :  { %v2327_v57 = vrot.slane %v193_v12, %v2317_v53  ;;  %v2330_v59 = vrot.slane %v193_v12, %v2322_v55 }
  0xa0   :  { %594 = vmatmul.mubr.bf16.gmra.mxu0 %v254_v15 }
  0xa1   :  { %603 = vmatprep.mubr.bf16.mxu0 %v258_v16 }
  0xa8   :  { %604 = vmatmul.mubr.bf16.gmra.mxu0 %v257_v21 }
 0x11b   :  { %v648_v40 = vpop.f32.mrf.mxu1 }
 0x11d   :  { %v650_v41 = vpop.f32.mrf.mxu1 }
 0x11f   :  { %v652_v42 = vpop.f32.mrf.mxu1 }
 0x121   :  { %v654_v43 = vpop.f32.mrf.mxu1 }
 0x123   :  { %v658_v46 = vpop.f32.mrf.mxu1 }
 0x125   :  { %v660_v48 = vpop.f32.mrf.mxu1 }
 0x127   :  { %v662_v49 = vpop.f32.mrf.mxu1 }
 0x129   :  { %v664_v51 = vpop.f32.mrf.mxu1 }
 0x12b   :  { %v2319_v54 = vpop.f32.mrf.mxu1 }
 0x12d   :  { %v2324_v56 = vpop.f32.mrf.mxu1 }
 0x12f   :  { %v672_v58 = vpop.f32.mrf.mxu1 }
 0x131   :  { %v2332_v61 = vpop.f32.mrf.mxu1 }
 0x133   :  { %v2335_v1 = vpop.f32.mrf.mxu1 }
 0x135   :  { %v2339_v5 = vpop.f32.mrf.mxu1 }
 0x137   :  { %v2342_v0 = vpop.f32.mrf.mxu1 }
 0x138   :  { %v545_v60 = vpop.f32.mrf.mxu0 }
 0x139   :  { %v546_v2 = vadd.f32 %v545_v60, %v2330_v59  ;;  %v2344_v14 = vpop.f32.mrf.mxu1 }
 0x13a   :  { %v547_v62 = vpop.f32.mrf.mxu0 }
 0x13b   :  { %v548_v63 = vadd.f32 %v547_v62, %v2327_v57  ;;  %v649_v10 = vadd.f32 %v648_v40, %v546_v2  ;;  %v2348_v28 = vpop.f32.mrf.mxu1 }
 0x13c   :  { %v549_v3 = vpop.f32.mrf.mxu0 }
 0x13d   :  { %v550_v4 = vadd.f32 %v549_v3, %v2330_v59  ;;  %v651_v7 = vadd.f32 %v650_v41, %v548_v63  ;;  %v717_v22 = vmax.f32 %v649_v10, 0.0  ;;  %v2352_v12 = vpop.f32.mrf.mxu1 }
 0x13e   :  { %v551_v6 = vpop.f32.mrf.mxu0 }
 0x13f   :  { %v653_v8 = vadd.f32 %v652_v42, %v550_v4  ;;  %v552_v9 = vadd.f32 %v551_v6, %v2327_v57  ;;  %v718_v18 = vmax.f32 %v651_v7, 0.0  ;;  %v2358_v6 = vpop.f32.mrf.mxu1 }
 0x140   :  { %v555_v11 = vpop.f32.mrf.mxu0 }
 0x141   :  { %v655_v13 = vadd.f32 %v654_v43, %v552_v9  ;;  %v719_v15 = vmax.f32 %v653_v8, 0.0  ;;  %v556_v23 = vadd.f32 %v555_v11, %v2330_v59 }
 0x142   :  { %v557_v16 = vpop.f32.mrf.mxu0 }
 0x143   :  { %v720_v20 = vmax.f32 %v655_v13, 0.0  ;;  %v558_v21 = vadd.f32 %v557_v16, %v2327_v57  ;;  %v745_v34 = vpack.c.bf16 %v719_v15, %v717_v22  ;;  %v659_v43 = vadd.f32 %v658_v46, %v556_v23  ;;  %v694_v15 = vpop.f32.mrf.mxu1 }
 0x144   :  { %v559_v25 = vpop.f32.mrf.mxu0 }
 0x145   :  { %v560_v29 = vadd.f32 %v559_v25, %v2330_v59  ;;  %v746_v32 = vpack.c.bf16 %v720_v20, %v718_v18  ;;  %v661_v40 = vadd.f32 %v660_v48, %v558_v21  ;;  %v721_v3 = vmax.f32 %v659_v43, 0.0  ;;  %v2371_v22 = vpop.f32.mrf.mxu1 }
 0x146   :  { %v561_v38 = vpop.f32.mrf.mxu0 }
 0x147   :  { %v663_v41 = vadd.f32 %v662_v49, %v560_v29  ;;  %v562_v42 = vadd.f32 %v561_v38, %v2327_v57  ;;  %1063 = vmatprep.mubr.bf16.mxu1 %v746_v32  ;;  %1166 = vmatprep.mubr.bf16.mxu0 %v746_v32  ;;  %v722_v2 = vmax.f32 %v661_v40, 0.0  ;;  %v700_v40 = vpop.f32.mrf.mxu1 }
 0x148   :  { %v565_v47 = vpop.f32.mrf.mxu0  ;;  %1064 = vmatmul.mubr.bf16.vlgmr.msra.gmra.mxu1 %v745_v34  ;;  %1167 = vmatmul.mubr.bf16.vlgmr.msra.gmra.mxu0 %v745_v34 }
 0x149   :  { %v665_v60 = vadd.f32 %v664_v51, %v562_v42  ;;  %1899 = vmatpush3.bf16.msra.mxu1 %v2264_v17  ;;  %v723_v62 = vmax.f32 %v663_v41, 0.0  ;;  %v566_v4 = vadd.f32 %v565_v47, %v2330_v59 }
 0x14a   :  { %v567_v63 = vpop.f32.mrf.mxu0  ;;  %1892 = vmatprep.subr.bf16.mxu1 %v2267_v19 }
 0x14b   :  { %v724_v48 = vmax.f32 %v665_v60, 0.0  ;;  %v568_v49 = vadd.f32 %v567_v63, %v2327_v57  ;;  %v747_v51 = vpack.c.bf16 %v723_v62, %v721_v3  ;;  %v669_v11 = vadd.f32 %v2319_v54, %v566_v4  ;;  %v702_v60 = vpop.f32.mrf.mxu1 }
 0x14c   :  { %v569_v46 = vpop.f32.mrf.mxu0 }
 0x14d   :  { %v570_v7 = vadd.f32 %v569_v46, %v2330_v59  ;;  %v748_v8 = vpack.c.bf16 %v724_v48, %v722_v2  ;;  %1900 = vmatpush3.bf16.msra.mxu1 %v2269_v26  ;;  %v671_v19 = vadd.f32 %v2324_v56, %v568_v49  ;;  %v725_v20 = vmax.f32 %v669_v11, 0.0  ;;  %v704_v4 = vpop.f32.mrf.mxu1 }
 0x14e   :  { %v571_v17 = vpop.f32.mrf.mxu0  ;;  %1893 = vmatprep.subr.bf16.mxu1 %v2273_v30 }
 0x14f   :  { %v673_v9 = vadd.f32 %v672_v58, %v570_v7  ;;  %v572_v10 = vadd.f32 %v571_v17, %v2327_v57  ;;  %1073 = vmatprep.mubr.bf16.mxu1 %v748_v8  ;;  %1174 = vmatprep.mubr.bf16.mxu0 %v748_v8  ;;  %v726_v30 = vmax.f32 %v671_v19, 0.0 }
 0x150   :  { %v575_v13 = vpop.f32.mrf.mxu0  ;;  %1074 = vmatmul.mubr.bf16.gmra.mxu1 %v747_v51  ;;  %1175 = vmatmul.mubr.bf16.gmra.mxu0 %v747_v51 }
 0x151   :  { %v675_v16 = vadd.f32 %v2332_v61, %v572_v10  ;;  %1901 = vmatpush3.bf16.msra.mxu1 %v2277_v35  ;;  %v727_v26 = vmax.f32 %v673_v9, 0.0  ;;  %v576_v21 = vadd.f32 %v575_v13, %v2330_v59 }
 0x152   :  { %v577_v18 = vpop.f32.mrf.mxu0  ;;  %1894 = vmatprep.subr.bf16.mxu1 %v2279_v36 }
 0x153   :  { %v728_v56 = vmax.f32 %v675_v16, 0.0  ;;  %v578_v58 = vadd.f32 %v577_v18, %v2327_v57  ;;  %v749_v61 = vpack.c.bf16 %v727_v26, %v725_v20  ;;  %v679_v34 = vadd.f32 %v2335_v1, %v576_v21 }
 0x154   :  { %v579_v54 = vpop.f32.mrf.mxu0 }
 0x155   :  { %v580_v23 = vadd.f32 %v579_v54, %v2330_v59  ;;  %v750_v25 = vpack.c.bf16 %v728_v56, %v726_v30  ;;  %1902 = vmatpush3.bf16.msra.mxu1 %v2282_v44  ;;  %v681_v36 = vadd.f32 %v2339_v5, %v578_v58  ;;  %v729_v43 = vmax.f32 %v679_v34, 0.0 }
 0x156   :  { %v581_v35 = vpop.f32.mrf.mxu0  ;;  %1895 = vmatprep.subr.bf16.mxu1 %v2284_v45 }
 0x157   :  { %v683_v29 = vadd.f32 %v2342_v0, %v580_v23  ;;  %v582_v32 = vadd.f32 %v581_v35, %v2327_v57  ;;  %1083 = vmatprep.mubr.bf16.mxu1 %v750_v25  ;;  %1182 = vmatprep.mubr.bf16.mxu0 %v750_v25  ;;  %v730_v5 = vmax.f32 %v681_v36, 0.0 }
 0x158   :  { %v585_v38 = vpop.f32.mrf.mxu0  ;;  %1084 = vmatmul.mubr.bf16.gmra.mxu1 %v749_v61  ;;  %1183 = vmatmul.mubr.bf16.gmra.mxu0 %v749_v61 }
 0x159   :  { %v685_v44 = vadd.f32 %v2344_v14, %v582_v32  ;;  %1903 = vmatpush3.bf16.msra.mxu1 %v2290_v52  ;;  %v731_v41 = vmax.f32 %v683_v29, 0.0  ;;  %v586_v47 = vadd.f32 %v585_v38, %v2330_v59 }
 0x15a   :  { %v587_v45 = vpop.f32.mrf.mxu0  ;;  %1896 = vmatprep.subr.bf16.mxu1 %v2295_v24 }
 0x15b   :  { %v732_v0 = vmax.f32 %v685_v44, 0.0  ;;  %v588_v42 = vadd.f32 %v587_v45, %v2327_v57  ;;  %v751_v52 = vpack.c.bf16 %v731_v41, %v729_v43  ;;  %v689_v49 = vadd.f32 %v2348_v28, %v586_v47  ;;  %v708_v28 = vpop.f32.mrf.mxu1 }
 0x15c   :  { %v589_v1 = vpop.f32.mrf.mxu0  ;;  %v2408_v43 = vsub.s32 2, %v2314_v50 }
 0x15d   :  { %v590_v62 = vadd.f32 %v589_v1, %v2330_v59  ;;  %v752_v63 = vpack.c.bf16 %v732_v0, %v730_v5  ;;  %1904 = vmatpush3.bf16.msra.mxu1 %v2297_v27  ;;  %v691_v24 = vadd.f32 %v2352_v12, %v588_v42  ;;  %v733_v8 = vmax.f32 %v689_v49, 0.0  ;;  %v710_v16 = vpop.f32.mrf.mxu1 }
 0x15e   :  { %v591_v14 = vpop.f32.mrf.mxu0  ;;  %1897 = vmatprep.subr.bf16.mxu1 %v2301_v31 }
 0x15f   :  { %v693_v2 = vadd.f32 %v2358_v6, %v590_v62  ;;  %v592_v48 = vadd.f32 %v591_v14, %v2327_v57  ;;  %1093 = vmatprep.mubr.bf16.mxu1 %v752_v63  ;;  %1190 = vmatprep.mubr.bf16.mxu0 %v752_v63  ;;  %v734_v31 = vmax.f32 %v691_v24, 0.0  ;;  %v712_v23 = vpop.f32.mrf.mxu1 }
 0x160   :  { %v595_v3 = vpop.f32.mrf.mxu0  ;;  %1094 = vmatmul.mubr.bf16.gmra.mxu1 %v751_v52  ;;  %1191 = vmatmul.mubr.bf16.gmra.mxu0 %v751_v52 }
 0x161   :  { %v695_v46 = vadd.f32 %v694_v15, %v592_v48  ;;  %1905 = vmatpush3.bf16.msra.mxu1 %v2303_v33  ;;  %v735_v27 = vmax.f32 %v693_v2, 0.0  ;;  %v596_v17 = vadd.f32 %v595_v3, %v2330_v59 }
 0x162   :  { %v597_v7 = vpop.f32.mrf.mxu0  ;;  %1898 = vmatprep.subr.bf16.mxu1 %v2307_v37 }
 0x163   :  { %v736_v12 = vmax.f32 %v695_v46, 0.0  ;;  %v598_v6 = vadd.f32 %v597_v7, %v2327_v57  ;;  %v753_v33 = vpack.c.bf16 %v735_v27, %v733_v8  ;;  %v699_v15 = vadd.f32 %v2371_v22, %v596_v17 }
 0x164   :  { %v599_v51 = vpop.f32.mrf.mxu0 }
 0x165   :  { %v600_v19 = vadd.f32 %v599_v51, %v2330_v59  ;;  %v754_v9 = vpack.c.bf16 %v736_v12, %v734_v31  ;;  %1906 = vmatpush3.bf16.msra.mxu1 %v2309_v39  ;;  %v701_v11 = vadd.f32 %v700_v40, %v598_v6  ;;  %v737_v21 = vmax.f32 %v699_v15, 0.0  ;;  %v714_v40 = vpop.f32.mrf.mxu1 }
 0x166   :  { %v601_v10 = vpop.f32.mrf.mxu0 }
 0x167   :  { %v703_v13 = vadd.f32 %v702_v60, %v600_v19  ;;  %v602_v37 = vadd.f32 %v601_v10, %v2327_v57  ;;  %1103 = vmatprep.mubr.bf16.mxu1 %v754_v9  ;;  %1198 = vmatprep.mubr.bf16.mxu0 %v754_v9  ;;  %v738_v58 = vmax.f32 %v701_v11, 0.0 }
 0x168   :  { %v605_v26 = vpop.f32.mrf.mxu0  ;;  %1104 = vmatmul.mubr.bf16.gmra.mxu1 %v753_v33  ;;  %1199 = vmatmul.mubr.bf16.gmra.mxu0 %v753_v33 }
 0x169   :  { %v705_v18 = vadd.f32 %v704_v4, %v602_v37  ;;  %v739_v30 = vmax.f32 %v703_v13, 0.0  ;;  %v606_v54 = vadd.f32 %v605_v26, %v2330_v59 }
 0x16a   :  { %v607_v56 = vpop.f32.mrf.mxu0 }
 0x16b   :  { %v740_v20 = vmax.f32 %v705_v18, 0.0  ;;  %v608_v39 = vadd.f32 %v607_v56, %v2327_v57  ;;  %v755_v36 = vpack.c.bf16 %v739_v30, %v737_v21  ;;  %v709_v38 = vadd.f32 %v708_v28, %v606_v54 }
 0x16c   :  { %v609_v25 = vpop.f32.mrf.mxu0 }
 0x16d   :  { %v610_v35 = vadd.f32 %v609_v25, %v2330_v59  ;;  %v756_v61 = vpack.c.bf16 %v740_v20, %v738_v58  ;;  %v711_v29 = vadd.f32 %v710_v16, %v608_v39  ;;  %v741_v0 = vmax.f32 %v709_v38, 0.0 }
 0x16e   :  { %v611_v22 = vpop.f32.mrf.mxu0 }
 0x16f   :  { %v713_v32 = vadd.f32 %v712_v23, %v610_v35  ;;  %v612_v34 = vadd.f32 %v611_v22, %v2327_v57  ;;  %1113 = vmatprep.mubr.bf16.mxu1 %v756_v61  ;;  %1206 = vmatprep.mubr.bf16.mxu0 %v756_v61  ;;  %v742_v45 = vmax.f32 %v711_v29, 0.0  ;;  %v194_v57 = vld [vmem:[%s2922_s4] sm:$0x7] }
 0x170   :  { %1114 = vmatmul.mubr.bf16.gmra.mxu1 %v755_v36  ;;  %1207 = vmatmul.mubr.bf16.gmra.mxu0 %v755_v36  ;;  %v2411_v47 = vrot.slane %v194_v57, %v2322_v55  ;;  %v2414_v1 = vrot.slane %v194_v57, %v2317_v53  ;;  %v2417_v63 = vrot.slane %v194_v57, %v2408_v43 }
 0x171   :  { %v715_v44 = vadd.f32 %v714_v40, %v612_v34  ;;  %v743_v41 = vmax.f32 %v713_v32, 0.0 }
 0x173   :  { %v744_v5 = vmax.f32 %v715_v44, 0.0  ;;  %v757_v59 = vpack.c.bf16 %v743_v41, %v741_v0 }
 0x175   :  { %v758_v42 = vpack.c.bf16 %v744_v5, %v742_v45 }
 0x177   :  { %1123 = vmatprep.mubr.bf16.mxu1 %v758_v42 }
 0x178   :  { %1124 = vmatmul.mubr.bf16.gmra.mxu1 %v757_v59 }
 0x179   :  { %1214 = vmatprep.mubr.bf16.mxu1 %v758_v42 }
 0x180   :  { %1215 = vmatmul.mubr.bf16.vlgmr.msra.gmra.mxu1 %v757_v59 }
 0x208   :  { %v1065_v60 = vpop.f32.mrf.mxu1  ;;  %v1849_v62 = vpop.f32.mrf.mxu0 }
 0x209   :  { %v2420_v14 = vadd.f32 %v1065_v60, %v2411_v47 }
 0x20a   :  { %v1067_v52 = vpop.f32.mrf.mxu1  ;;  %v1850_v24 = vpop.f32.mrf.mxu0 }
 0x20b   :  { %v2423_v2 = vadd.f32 %v1067_v52, %v2414_v1  ;;  %v1851_v50 = vadd.f32 %v1850_v24, %v1849_v62  ;;  %v1294_v27 = vmul.f32 %v2420_v14, %v2420_v14 }
 0x20c   :  { %v1069_v48 = vpop.f32.mrf.mxu1  ;;  %v1852_v49 = vpop.f32.mrf.mxu0 }
 0x20d   :  { %v1295_v3 = vmul.f32 %v2423_v2, %v2423_v2  ;;  %v2428_v4 = vadd.f32 %v1851_v50, %v2417_v63  ;;  %v1223_v46 = vadd.f32 %v2423_v2, %v2420_v14  ;;  %v2435_v7 = vadd.f32 %v1069_v48, %v2411_v47 }
 0x20e   :  { %v1071_v31 = vpop.f32.mrf.mxu1  ;;  %v1853_v12 = vpop.f32.mrf.mxu0 }
 0x20f   :  { %v2438_v6 = vadd.f32 %v1071_v31, %v2414_v1  ;;  %v1854_v8 = vadd.f32 %v1853_v12, %v1852_v49  ;;  %v1224_v17 = vadd.f32 %v1223_v46, %v2428_v4  ;;  %v1296_v51 = vmul.f32 %v2428_v4, %v2428_v4 }
 0x210   :  { %v1075_v28 = vpop.f32.mrf.mxu1  ;;  %v1855_v19 = vpop.f32.mrf.mxu0  ;;  %v1336_v9 = vadd.f32 %v1295_v3, %v1294_v27  ;;  %v1297_v15 = vmul.f32 %v2435_v7, %v2435_v7 }
 0x211   :  { %v2444_v10 = vadd.f32 %v1854_v8, %v2417_v63  ;;  %1225 = vadd.xlane.f32.xlu0 %v1224_v17  ;;  %v1298_v33 = vmul.f32 %v2438_v6, %v2438_v6  ;;  %v2449_v11 = vadd.f32 %v1075_v28, %v2411_v47  ;;  %v1227_v16 = vadd.f32 %v2438_v6, %v2435_v7 }
 0x212   :  { %v1077_v13 = vpop.f32.mrf.mxu1  ;;  %v1856_v37 = vpop.f32.mrf.mxu0  ;;  %v1337_v30 = vadd.f32 %v1336_v9, %v1296_v51 }
 0x213   :  { %v2456_v26 = vadd.f32 %v1077_v13, %v2414_v1  ;;  %v1857_v18 = vadd.f32 %v1856_v37, %v1855_v19  ;;  %v1299_v56 = vmul.f32 %v2444_v10, %v2444_v10  ;;  %v1340_v39 = vadd.f32 %v1298_v33, %v1297_v15 }
 0x214   :  { %v1079_v58 = vpop.f32.mrf.mxu1  ;;  %v1858_v20 = vpop.f32.mrf.mxu0  ;;  %v1300_v23 = vmul.f32 %v2449_v11, %v2449_v11  ;;  %v1228_v34 = vadd.f32 %v1227_v16, %v2444_v10 }
 0x215   :  { %v1301_v21 = vmul.f32 %v2456_v26, %v2456_v26  ;;  %v2463_v54 = vadd.f32 %v1857_v18, %v2417_v63  ;;  %1338 = vadd.xlane.f32.xlu0 %v1337_v30  ;;  %v1341_v61 = vadd.f32 %v1340_v39, %v1299_v56  ;;  %v1231_v22 = vadd.f32 %v2456_v26, %v2449_v11 }
 0x216   :  { %v1081_v25 = vpop.f32.mrf.mxu1  ;;  %v1859_v35 = vpop.f32.mrf.mxu0  ;;  %v2470_v36 = vadd.f32 %v1079_v58, %v2411_v47 }
 0x217   :  { %v2473_v29 = vadd.f32 %v1081_v25, %v2414_v1  ;;  %v1860_v32 = vadd.f32 %v1859_v35, %v1858_v20  ;;  %1342 = vadd.xlane.f32.xlu1 %v1341_v61  ;;  %v1302_v44 = vmul.f32 %v2463_v54, %v2463_v54  ;;  %v1344_v41 = vadd.f32 %v1301_v21, %v1300_v23 }
 0x218   :  { %v1085_v38 = vpop.f32.mrf.mxu1  ;;  %v1861_v40 = vpop.f32.mrf.mxu0  ;;  %v1232_v57 = vadd.f32 %v1231_v22, %v2463_v54  ;;  %v1303_v62 = vmul.f32 %v2470_v36, %v2470_v36 }
 0x219   :  { %v1304_v45 = vmul.f32 %v2473_v29, %v2473_v29  ;;  %v2481_v5 = vadd.f32 %v1860_v32, %v2417_v63  ;;  %1229 = vadd.xlane.f32.xlu0 %v1228_v34  ;;  %v2484_v0 = vadd.f32 %v1085_v38, %v2411_v47  ;;  %v1235_v60 = vadd.f32 %v2473_v29, %v2470_v36 }
 0x21a   :  { %v1087_v42 = vpop.f32.mrf.mxu1  ;;  %v1862_v59 = vpop.f32.mrf.mxu0  ;;  %v1345_v50 = vadd.f32 %v1344_v41, %v1302_v44 }
 0x21b   :  { %v2492_v52 = vadd.f32 %v1087_v42, %v2414_v1  ;;  %v1863_v24 = vadd.f32 %v1862_v59, %v1861_v40  ;;  %1233 = vadd.xlane.f32.xlu1 %v1232_v57  ;;  %v1305_v3 = vmul.f32 %v2481_v5, %v2481_v5  ;;  %v1348_v12 = vadd.f32 %v1304_v45, %v1303_v62 }
 0x21c   :  { %v1089_v48 = vpop.f32.mrf.mxu1  ;;  %v1864_v49 = vpop.f32.mrf.mxu0  ;;  %v1306_v8 = vmul.f32 %v2484_v0, %v2484_v0  ;;  %v1236_v28 = vadd.f32 %v1235_v60, %v2481_v5 }
 0x21d   :  { %v1307_v46 = vmul.f32 %v2492_v52, %v2492_v52  ;;  %v2499_v27 = vadd.f32 %v1863_v24, %v2417_v63  ;;  %1346 = vadd.xlane.f32.xlu0 %v1345_v50  ;;  %v1239_v31 = vadd.f32 %v2492_v52, %v2484_v0  ;;  %v2511_v13 = vadd.f32 %v1089_v48, %v2411_v47 }
 0x21e   :  { %v1091_v17 = vpop.f32.mrf.mxu1  ;;  %v1865_v51 = vpop.f32.mrf.mxu0  ;;  %v1349_v30 = vadd.f32 %v1348_v12, %v1305_v3 }
 0x21f   :  { %v2507_v19 = vadd.f32 %v1091_v17, %v2414_v1  ;;  %v1866_v9 = vadd.f32 %v1865_v51, %v1864_v49  ;;  %v1240_v33 = vadd.f32 %v1239_v31, %v2499_v27  ;;  %1237 = vadd.xlane.f32.xlu1 %v1236_v28  ;;  %v1308_v16 = vmul.f32 %v2499_v27, %v2499_v27 }
 0x220   :  { %v1095_v37 = vpop.f32.mrf.mxu1  ;;  %v1867_v15 = vpop.f32.mrf.mxu0  ;;  %v1352_v18 = vadd.f32 %v1307_v46, %v1306_v8  ;;  %v1309_v22 = vmul.f32 %v2511_v13, %v2511_v13 }
 0x221   :  { %1241 = vadd.xlane.f32.xlu0 %v1240_v33  ;;  %v1310_v56 = vmul.f32 %v2507_v19, %v2507_v19  ;;  %v2518_v58 = vadd.f32 %v1866_v9, %v2417_v63  ;;  %v2521_v20 = vadd.f32 %v1095_v37, %v2411_v47  ;;  %v1243_v23 = vadd.f32 %v2507_v19, %v2511_v13 }
 0x222   :  { %v1097_v39 = vpop.f32.mrf.mxu1  ;;  %v1868_v21 = vpop.f32.mrf.mxu0  ;;  %v1353_v61 = vadd.f32 %v1352_v18, %v1308_v16 }
 0x223   :  { %v2526_v25 = vadd.f32 %v1097_v39, %v2414_v1  ;;  %v1869_v35 = vadd.f32 %v1868_v21, %v1867_v15  ;;  %1350 = vadd.xlane.f32.xlu1 %v1349_v30  ;;  %v1312_v41 = vmul.f32 %v2521_v20, %v2521_v20  ;;  %v1244_v59 = vadd.f32 %v1243_v23, %v2518_v58 }
 0x224   :  { %v1099_v32 = vpop.f32.mrf.mxu1  ;;  %v1870_v34 = vpop.f32.mrf.mxu0  ;;  %v1311_v57 = vmul.f32 %v2518_v58, %v2518_v58  ;;  %v1356_v60 = vadd.f32 %v1310_v56, %v1309_v22 }
 0x225   :  { %v1313_v38 = vmul.f32 %v2526_v25, %v2526_v25  ;;  %v2533_v40 = vadd.f32 %v1869_v35, %v2417_v63  ;;  %1354 = vadd.xlane.f32.xlu0 %v1353_v61  ;;  %v1247_v44 = vadd.f32 %v2526_v25, %v2521_v20  ;;  %v2543_v62 = vadd.f32 %v1099_v32, %v2411_v47 }
 0x226   :  { %v1101_v45 = vpop.f32.mrf.mxu1  ;;  %v1871_v42 = vpop.f32.mrf.mxu0  ;;  %v1357_v9 = vadd.f32 %v1356_v60, %v1311_v57 }
 0x227   :  { %v2546_v24 = vadd.f32 %v1101_v45, %v2414_v1  ;;  %v1872_v50 = vadd.f32 %v1871_v42, %v1870_v34  ;;  %v1248_v48 = vadd.f32 %v1247_v44, %v2533_v40  ;;  %1245 = vadd.xlane.f32.xlu1 %v1244_v59  ;;  %v1314_v46 = vmul.f32 %v2533_v40, %v2533_v40 }
 0x228   :  { %v1105_v49 = vpop.f32.mrf.mxu1  ;;  %v1873_v3 = vpop.f32.mrf.mxu0  ;;  %v1360_v31 = vadd.f32 %v1313_v38, %v1312_v41  ;;  %v1315_v37 = vmul.f32 %v2543_v62, %v2543_v62 }
 0x229   :  { %v1316_v12 = vmul.f32 %v2546_v24, %v2546_v24  ;;  %v2554_v8 = vadd.f32 %v1872_v50, %v2417_v63  ;;  %1249 = vadd.xlane.f32.xlu0 %v1248_v48  ;;  %v2557_v17 = vadd.f32 %v1105_v49, %v2411_v47  ;;  %v1251_v33 = vadd.f32 %v2546_v24, %v2543_v62 }
 0x22a   :  { %v1107_v51 = vpop.f32.mrf.mxu1  ;;  %v1874_v28 = vpop.f32.mrf.mxu0  ;;  %v1361_v18 = vadd.f32 %v1360_v31, %v1314_v46 }
 0x22b   :  { %v2564_v15 = vadd.f32 %v1107_v51, %v2414_v1  ;;  %v1875_v16 = vadd.f32 %v1874_v28, %v1873_v3  ;;  %1358 = vadd.xlane.f32.xlu1 %v1357_v9  ;;  %v1317_v39 = vmul.f32 %v2554_v8, %v2554_v8  ;;  %v1364_v61 = vadd.f32 %v1316_v12, %v1315_v37 }
 0x22c   :  { %v1109_v30 = vpop.f32.mrf.mxu1  ;;  %v1876_v56 = vpop.f32.mrf.mxu0  ;;  %v1318_v22 = vmul.f32 %v2557_v17, %v2557_v17  ;;  %v1252_v38 = vadd.f32 %v1251_v33, %v2554_v8 }
 0x22d   :  { %v1319_v21 = vmul.f32 %v2564_v15, %v2564_v15  ;;  %v2571_v23 = vadd.f32 %v1875_v16, %v2417_v63  ;;  %1362 = vadd.xlane.f32.xlu0 %v1361_v18  ;;  %v1255_v35 = vadd.f32 %v2564_v15, %v2557_v17  ;;  %v2583_v42 = vadd.f32 %v1109_v30, %v2411_v47 }
 0x22e   :  { %v1111_v32 = vpop.f32.mrf.mxu1  ;;  %v1877_v34 = vpop.f32.mrf.mxu0  ;;  %v1365_v48 = vadd.f32 %v1364_v61, %v1317_v39 }
 0x22f   :  { %v2579_v44 = vadd.f32 %v1111_v32, %v2414_v1  ;;  %v1878_v41 = vadd.f32 %v1877_v34, %v1876_v56  ;;  %v1256_v45 = vadd.f32 %v1255_v35, %v2571_v23  ;;  %1253 = vadd.xlane.f32.xlu1 %v1252_v38  ;;  %v1320_v60 = vmul.f32 %v2571_v23, %v2571_v23 }
 0x230   :  { %v1115_v59 = vpop.f32.mrf.mxu1  ;;  %v1879_v57 = vpop.f32.mrf.mxu0  ;;  %v1368_v50 = vadd.f32 %v1319_v21, %v1318_v22  ;;  %v1321_v37 = vmul.f32 %v2583_v42, %v2583_v42 }
 0x231   :  { %1257 = vadd.xlane.f32.xlu0 %v1256_v45  ;;  %v1322_v49 = vmul.f32 %v2579_v44, %v2579_v44  ;;  %v2590_v3 = vadd.f32 %v1878_v41, %v2417_v63  ;;  %v2593_v46 = vadd.f32 %v1115_v59, %v2411_v47  ;;  %v1259_v51 = vadd.f32 %v2579_v44, %v2583_v42 }
 0x232   :  { %v1117_v31 = vpop.f32.mrf.mxu1  ;;  %v1880_v12 = vpop.f32.mrf.mxu0  ;;  %v1369_v33 = vadd.f32 %v1368_v50, %v1320_v60 }
 0x233   :  { %v2598_v28 = vadd.f32 %v1117_v31, %v2414_v1  ;;  %v1881_v9 = vadd.f32 %v1880_v12, %v1879_v57  ;;  %1366 = vadd.xlane.f32.xlu1 %v1365_v48  ;;  %v1324_v21 = vmul.f32 %v2593_v46, %v2593_v46  ;;  %v1260_v22 = vadd.f32 %v1259_v51, %v2590_v3 }
 0x234   :  { %v1119_v16 = vpop.f32.mrf.mxu1  ;;  %v1882_v18 = vpop.f32.mrf.mxu0  ;;  %v1323_v32 = vmul.f32 %v2590_v3, %v2590_v3  ;;  %v1372_v34 = vadd.f32 %v1322_v49, %v1321_v37 }
 0x235   :  { %v1325_v30 = vmul.f32 %v2598_v28, %v2598_v28  ;;  %v2605_v56 = vadd.f32 %v1881_v9, %v2417_v63  ;;  %1370 = vadd.xlane.f32.xlu0 %v1369_v33  ;;  %v1263_v39 = vadd.f32 %v2598_v28, %v2593_v46  ;;  %v2619_v59 = vadd.f32 %v1119_v16, %v2411_v47 }
 0x236   :  { %v1121_v35 = vpop.f32.mrf.mxu1  ;;  %v1883_v61 = vpop.f32.mrf.mxu0  ;;  %v1373_v12 = vadd.f32 %v1372_v34, %v1323_v32 }
 0x237   :  { %v2615_v38 = vadd.f32 %v1121_v35, %v2414_v1  ;;  %v1884_v41 = vadd.f32 %v1883_v61, %v1882_v18  ;;  %v1264_v45 = vadd.f32 %v1263_v39, %v2605_v56  ;;  %1261 = vadd.xlane.f32.xlu1 %v1260_v22  ;;  %v1326_v60 = vmul.f32 %v2605_v56, %v2605_v56 }
 0x238   :  { %v1125_v57 = vpop.f32.mrf.mxu1  ;;  %v1376_v50 = vadd.f32 %v1325_v30, %v1324_v21  ;;  %v1327_v33 = vmul.f32 %v2619_v59, %v2619_v59 }
 0x239   :  { %1265 = vadd.xlane.f32.xlu0 %v1264_v45  ;;  %v1328_v48 = vmul.f32 %v2615_v38, %v2615_v38  ;;  %v2626_v49 = vadd.f32 %v1884_v41, %v2417_v63  ;;  %v1267_v51 = vadd.f32 %v2615_v38, %v2619_v59  ;;  %v2639_v61 = vadd.f32 %v1125_v57, %v2411_v47 }
 0x23a   :  { %v1127_v31 = vpop.f32.mrf.mxu1  ;;  %v1377_v9 = vadd.f32 %v1376_v50, %v1326_v60 }
 0x23b   :  { %2933 = vst [vmem:[#allocation15_spill] sm:$0xff] %v2626_v49  ;;  %1374 = vadd.xlane.f32.xlu1 %v1373_v12  ;;  %v1268_v18 = vadd.f32 %v1267_v51, %v2626_v49  ;;  %v1329_v30 = vmul.f32 %v2626_v49, %v2626_v49  ;;  %v1380_v39 = vadd.f32 %v1328_v48, %v1327_v33  ;;  %2935 = vst [vmem:[#allocation17_spill] sm:$0xff] %v2639_v61 }
 0x23c   :  { %v1129_v37 = vpop.f32.mrf.mxu1  ;;  %v2636_v35 = vadd.f32 %v1127_v31, %v2414_v1  ;;  %v1330_v57 = vmul.f32 %v2639_v61, %v2639_v61 }
 0x23d   :  { %1378 = vadd.xlane.f32.xlu0 %v1377_v9  ;;  %v1381_v32 = vadd.f32 %v1380_v39, %v1329_v30  ;;  %v2654_v12 = vadd.f32 %v1129_v37, %v2411_v47 }
 0x23e   :  { %v1131_v16 = vpop.f32.mrf.mxu1  ;;  %2934 = vst [vmem:[#allocation16_spill] sm:$0xff] %v2636_v35  ;;  %v1331_v45 = vmul.f32 %v2636_v35, %v2636_v35  ;;  %v1271_v48 = vadd.f32 %v2636_v35, %v2639_v61 }
 0x23f   :  { %1269 = vadd.xlane.f32.xlu1 %v1268_v18  ;;  %v2644_v60 = vadd.f32 %v1131_v16, %v2414_v1  ;;  %2938 = vst [vmem:[#allocation20_spill] sm:$0xff] %v2654_v12  ;;  %v1333_v47 = vmul.f32 %v2654_v12, %v2654_v12 }
 0x240   :  { %v1885_v21 = vpop.f32.mrf.mxu1  ;;  %v1384_v30 = vadd.f32 %v1331_v45, %v1330_v57 }
 0x241   :  { %2936 = vst [vmem:[#allocation18_spill] sm:$0xff] %v2644_v60  ;;  %v1334_v33 = vmul.f32 %v2644_v60, %v2644_v60  ;;  %v1275_v18 = vadd.f32 %v2644_v60, %v2654_v12 }
 0x242   :  { %v1886_v22 = vpop.f32.mrf.mxu1 }
 0x243   :  { %v1887_v34 = vadd.f32 %v1886_v22, %v1885_v21  ;;  %1382 = vadd.xlane.f32.xlu1 %v1381_v32  ;;  %v1388_v22 = vadd.f32 %v1334_v33, %v1333_v47 }
 0x244   :  { %v1888_v41 = vpop.f32.mrf.mxu1 }
 0x245   :  { %v2647_v50 = vadd.f32 %v1887_v34, %v2417_v63 }
 0x246   :  { %v1889_v31 = vpop.f32.mrf.mxu1 }
 0x247   :  { %2937 = vst [vmem:[#allocation19_spill] sm:$0xff] %v2647_v50  ;;  %v1890_v51 = vadd.f32 %v1889_v31, %v1888_v41  ;;  %v1272_v9 = vadd.f32 %v1271_v48, %v2647_v50  ;;  %v1332_v1 = vmul.f32 %v2647_v50, %v2647_v50 }
 0x249   :  { %v2662_v16 = vadd.f32 %v1890_v51, %v2417_v63  ;;  %1273 = vadd.xlane.f32.xlu0 %v1272_v9  ;;  %v1385_v39 = vadd.f32 %v1384_v30, %v1332_v1 }
 0x24b   :  { %2939 = vst [vmem:[#allocation21_spill] sm:$0xff] %v2662_v16  ;;  %v1276_v37 = vadd.f32 %v1275_v18, %v2662_v16  ;;  %v1335_v21 = vmul.f32 %v2662_v16, %v2662_v16 }
 0x24d   :  { %1277 = vadd.xlane.f32.xlu1 %v1276_v37  ;;  %1386 = vadd.xlane.f32.xlu0 %v1385_v39  ;;  %v1389_v32 = vadd.f32 %v1388_v22, %v1335_v21 }
 0x251   :  { %1390 = vadd.xlane.f32.xlu1 %v1389_v32 }
 0x29a   :  { %v1226_v63 = vpop.xlane.xlu0 %1225 }
 0x29b   :  { %v1280_v34 = vmul.f32 0.0026041667, %v1226_v63 }
 0x29d   :  { %v1406_v48 = vmul.f32 %v1280_v34, %v1280_v34  ;;  %v1477_v12 = vsub.f32 %v2423_v2, %v1280_v34 }
 0x29e   :  { %v1339_v41 = vpop.xlane.xlu0 %1338 }
 0x29f   :  { %v1392_v31 = vmul.f32 0.0026041667, %v1339_v41 }
 0x2a0   :  { %v1343_v57 = vpop.xlane.xlu1 %1342 }
 0x2a1   :  { %v1420_v45 = vsub.f32 %v1392_v31, %v1406_v48  ;;  %v1393_v18 = vmul.f32 0.0026041667, %v1343_v57 }
 0x2a2   :  { %v1230_v51 = vpop.xlane.xlu0 %1229 }
 0x2a3   :  { %v1434_v9 = vmax.f32 %v1420_v45, 0.0  ;;  %v2671_v60 = vmul.f32 0.0026041667, %v1230_v51 }
 0x2a4   :  { %v1234_v37 = vpop.xlane.xlu1 %1233 }
 0x2a5   :  { %v1448_v1 = vadd.f32 1e-05, %v1434_v9  ;;  %v1407_v30 = vmul.f32 %v2671_v60, %v2671_v60  ;;  %v2675_v33 = vmul.f32 0.0026041667, %v1234_v37  ;;  %v1481_v2 = vsub.f32 %v2444_v10, %v2671_v60 }
 0x2a6   :  { %v1347_v47 = vpop.xlane.xlu0 %1346 }
 0x2a7   :  { %2055 = vrsqrt.f32 %v1448_v1  ;;  %v1421_v39 = vsub.f32 %v1393_v18, %v1407_v30  ;;  %v1394_v21 = vmul.f32 0.0026041667, %v1347_v47  ;;  %v1408_v22 = vmul.f32 %v2675_v33, %v2675_v33  ;;  %v195_v1 = vld [vmem:[%s2923_s5] sm:$0x7] }
 0x2a8   :  { %v1238_v63 = vpop.xlane.xlu1 %1237 }
 0x2a9   :  { %v1435_v32 = vmax.f32 %v1421_v39, 0.0  ;;  %v1422_v41 = vsub.f32 %v1394_v21, %v1408_v22  ;;  %v2679_v48 = vmul.f32 0.0026041667, %v1238_v63  ;;  %v196_v39 = vld [vmem:[%s2924_s6] sm:$0x7]  ;;  %v2694_v63 = vrot.slane %v195_v1, %v2322_v55 }
 0x2aa   :  { %v1242_v31 = vpop.xlane.xlu0 %1241  ;;  %v2706_v16 = vrot.slane %v196_v39, %v2317_v53 }
 0x2ab   :  { %v1449_v45 = vadd.f32 1e-05, %v1435_v32  ;;  %v2681_v57 = vmul.f32 0.0026041667, %v1242_v31  ;;  %v1436_v51 = vmax.f32 %v1422_v41, 0.0  ;;  %v1409_v30 = vmul.f32 %v2679_v48, %v2679_v48 }
 0x2ac   :  { %v1351_v9 = vpop.xlane.xlu1 %1350  ;;  %v2697_v41 = vrot.slane %v195_v1, %v2317_v53  ;;  %v2700_v31 = vrot.slane %v195_v1, %v2408_v43  ;;  %v1478_v1 = vsub.f32 %v2428_v4, %v1280_v34  ;;  %v1482_v4 = vsub.f32 %v2449_v11, %v2675_v33 }
 0x2ad   :  { %2057 = vrsqrt.f32 %v1449_v45  ;;  %v1450_v18 = vadd.f32 1e-05, %v1436_v51  ;;  %v1395_v37 = vmul.f32 0.0026041667, %v1351_v9  ;;  %v1410_v21 = vmul.f32 %v2681_v57, %v2681_v57 }
 0x2ae   :  { %v1355_v47 = vpop.xlane.xlu0 %1354  ;;  %v2703_v9 = vrot.slane %v196_v39, %v2322_v55  ;;  %v1479_v55 = vsub.f32 %v2435_v7, %v2671_v60 }
 0x2af   :  { %v1396_v22 = vmul.f32 0.0026041667, %v1355_v47  ;;  %2059 = vrsqrt.f32 %v1450_v18  ;;  %v1423_v32 = vsub.f32 %v1395_v37, %v1409_v30  ;;  %v2709_v18 = vrot.slane %v196_v39, %v2408_v43 }
 0x2b0   :  { %v1246_v51 = vpop.xlane.xlu1 %1245  ;;  %v1476_v47 = vsub.f32 %v2420_v14, %v1280_v34  ;;  %v1480_v14 = vsub.f32 %v2438_v6, %v2671_v60 }
 0x2b1   :  { %v1424_v45 = vsub.f32 %v1396_v22, %v1410_v21  ;;  %v1437_v30 = vmax.f32 %v1423_v32, 0.0  ;;  %v2716_v35 = vmul.f32 0.0026041667, %v1246_v51 }
 0x2b2   :  { %v1250_v37 = vpop.xlane.xlu0 %1249 }
 0x2b3   :  { %v1438_v50 = vmax.f32 %v1424_v45, 0.0  ;;  %v1451_v22 = vadd.f32 1e-05, %v1437_v30  ;;  %v2718_v53 = vmul.f32 0.0026041667, %v1250_v37  ;;  %v1483_v37 = vsub.f32 %v2456_v26, %v2675_v33 }
 0x2b4   :  { %v2056_v21 = vpop.eup %2055  ;;  %v1359_v49 = vpop.xlane.xlu1 %1358  ;;  %v1486_v26 = vsub.f32 %v2473_v29, %v2679_v48 }
 0x2b5   :  { %v1518_v43 = vmul.f32 %v2056_v21, %v1476_v47  ;;  %v1519_v39 = vmul.f32 %v2056_v21, %v1477_v12  ;;  %v1520_v32 = vmul.f32 %v2056_v21, %v1478_v1  ;;  %v1452_v61 = vadd.f32 1e-05, %v1438_v50 }
 0x2b6   :  { %2061 = vrsqrt.f32 %v1451_v22  ;;  %v1363_v7 = vpop.xlane.xlu0 %1362  ;;  %v1411_v50 = vmul.f32 %v2716_v35, %v2716_v35  ;;  %v1397_v51 = vmul.f32 0.0026041667, %v1359_v49  ;;  %v1412_v6 = vmul.f32 %v2718_v53, %v2718_v53 }
 0x2b7   :  { %v1576_v34 = vmul.f32 %v2694_v63, %v1518_v43  ;;  %v1577_v45 = vmul.f32 %v2697_v41, %v1519_v39  ;;  %v1578_v12 = vmul.f32 %v2700_v31, %v1520_v32  ;;  %2063 = vrsqrt.f32 %v1452_v61 }
 0x2b8   :  { %v1398_v10 = vmul.f32 0.0026041667, %v1363_v7  ;;  %v1254_v47 = vpop.xlane.xlu1 %1253  ;;  %v1484_v61 = vsub.f32 %v2463_v54, %v2675_v33  ;;  %v1485_v49 = vsub.f32 %v2470_v36, %v2679_v48  ;;  %v1425_v21 = vsub.f32 %v1397_v51, %v1411_v50 }
 0x2b9   :  { %v1634_v60 = vadd.f32 %v2703_v9, %v1576_v34  ;;  %v1635_v11 = vadd.f32 %v2706_v16, %v1577_v45  ;;  %v1636_v30 = vadd.f32 %v2709_v18, %v1578_v12  ;;  %v1487_v34 = vsub.f32 %v2481_v5, %v2679_v48 }
 0x2ba   :  { %v2058_v1 = vpop.eup %2057  ;;  %v1426_v22 = vsub.f32 %v1398_v10, %v1412_v6  ;;  %v1258_v43 = vpop.xlane.xlu0 %1257  ;;  %v1439_v45 = vmax.f32 %v1425_v21, 0.0  ;;  %v2746_v33 = vmul.f32 0.0026041667, %v1254_v47 }
 0x2bb   :  { %1676 = vst [vmem:[#allocation10] sm:$0xff] %v1634_v60  ;;  %1677 = vst [vmem:[#allocation10 + $0x8] sm:$0xff] %v1635_v11  ;;  %v1521_v39 = vmul.f32 %v2058_v1, %v1479_v55  ;;  %v1522_v32 = vmul.f32 %v2058_v1, %v1480_v14  ;;  %v1523_v7 = vmul.f32 %v2058_v1, %v1481_v2  ;;  %v2751_v55 = vmul.f32 0.0026041667, %v1258_v43 }
 0x2bc   :  { %1678 = vst [vmem:[#allocation10 + $0x10] sm:$0xff] %v1636_v30  ;;  %v1440_v54 = vmax.f32 %v1426_v22, 0.0  ;;  %v2060_v36 = vpop.eup %2059  ;;  %v1367_v14 = vpop.xlane.xlu1 %1366  ;;  %v1453_v10 = vadd.f32 1e-05, %v1439_v45 }
 0x2bd   :  { %v1579_v12 = vmul.f32 %v2694_v63, %v1521_v39  ;;  %v1580_v50 = vmul.f32 %v2697_v41, %v1522_v32  ;;  %v1581_v51 = vmul.f32 %v2700_v31, %v1523_v7  ;;  %v1524_v2 = vmul.f32 %v2060_v36, %v1482_v4 }
 0x2be   :  { %v1525_v6 = vmul.f32 %v2060_v36, %v1483_v37  ;;  %v1526_v29 = vmul.f32 %v2060_v36, %v1484_v61  ;;  %v1371_v60 = vpop.xlane.xlu0 %1370  ;;  %v1454_v30 = vadd.f32 1e-05, %v1440_v54  ;;  %2065 = vrsqrt.f32 %v1453_v10 }
 0x2bf   :  { %v1637_v5 = vadd.f32 %v2703_v9, %v1579_v12  ;;  %v1638_v48 = vadd.f32 %v2706_v16, %v1580_v50  ;;  %v1639_v11 = vadd.f32 %v2709_v18, %v1581_v51  ;;  %v1582_v47 = vmul.f32 %v2694_v63, %v1524_v2 }
 0x2c0   :  { %v1583_v1 = vmul.f32 %v2697_v41, %v1525_v6  ;;  %v1584_v21 = vmul.f32 %v2700_v31, %v1526_v29  ;;  %v1488_v4 = vsub.f32 %v2484_v0, %v2681_v57  ;;  %v1489_v37 = vsub.f32 %v2492_v52, %v2681_v57  ;;  %v1262_v22 = vpop.xlane.xlu1 %1261 }
 0x2c1   :  { %1679 = vst [vmem:[#allocation10 + $0x18] sm:$0xff] %v1637_v5  ;;  %1680 = vst [vmem:[#allocation10 + $0x20] sm:$0xff] %v1638_v48  ;;  %v1490_v61 = vsub.f32 %v2499_v27, %v2681_v57  ;;  %2067 = vrsqrt.f32 %v1454_v30  ;;  %v1640_v43 = vadd.f32 %v2703_v9, %v1582_v47  ;;  %v1413_v7 = vmul.f32 %v2746_v33, %v2746_v33 }
 0x2c2   :  { %1681 = vst [vmem:[#allocation10 + $0x28] sm:$0xff] %v1639_v11  ;;  %v1641_v39 = vadd.f32 %v2706_v16, %v1583_v1  ;;  %v1642_v32 = vadd.f32 %v2709_v18, %v1584_v21  ;;  %v1266_v45 = vpop.xlane.xlu0 %1265  ;;  %v1399_v0 = vmul.f32 0.0026041667, %v1367_v14  ;;  %v1414_v52 = vmul.f32 %v2751_v55, %v2751_v55 }
 0x2c3   :  { %v2062_v54 = vpop.eup %2061  ;;  %v1400_v36 = vmul.f32 0.0026041667, %v1371_v60  ;;  %v2772_v12 = vmul.f32 0.0026041667, %v1262_v22  ;;  %1682 = vst [vmem:[#allocation10 + $0x30] sm:$0xff] %v1640_v43 }
 0x2c4   :  { %v2064_v27 = vpop.eup %2063  ;;  %1683 = vst [vmem:[#allocation10 + $0x38] sm:$0xff] %v1641_v39  ;;  %1684 = vst [vmem:[#allocation10 + $0x40] sm:$0xff] %v1642_v32  ;;  %v1527_v57 = vmul.f32 %v2062_v54, %v1485_v49  ;;  %v1528_v50 = vmul.f32 %v2062_v54, %v1486_v26  ;;  %v1529_v51 = vmul.f32 %v2062_v54, %v1487_v34  ;;  %v2774_v2 = vmul.f32 0.0026041667, %v1266_v45  ;;  %v1375_v14 = vpop.xlane.xlu1 %1374 }
 0x2c5   :  { %v1530_v6 = vmul.f32 %v2064_v27, %v1488_v4  ;;  %v1531_v29 = vmul.f32 %v2064_v27, %v1489_v37  ;;  %v1532_v10 = vmul.f32 %v2064_v27, %v1490_v61  ;;  %v1427_v5 = vsub.f32 %v1399_v0, %v1413_v7 }
 0x2c6   :  { %v1585_v48 = vmul.f32 %v2694_v63, %v1527_v57  ;;  %v1586_v60 = vmul.f32 %v2697_v41, %v1528_v50  ;;  %v1587_v11 = vmul.f32 %v2700_v31, %v1529_v51  ;;  %v1428_v30 = vsub.f32 %v1400_v36, %v1414_v52  ;;  %v1379_v45 = vpop.xlane.xlu0 %1378 }
 0x2c7   :  { %v1588_v47 = vmul.f32 %v2694_v63, %v1530_v6  ;;  %v1589_v49 = vmul.f32 %v2697_v41, %v1531_v29  ;;  %v1590_v26 = vmul.f32 %v2700_v31, %v1532_v10  ;;  %v1441_v34 = vmax.f32 %v1427_v5, 0.0 }
 0x2c8   :  { %v1643_v1 = vadd.f32 %v2703_v9, %v1585_v48  ;;  %v1644_v21 = vadd.f32 %v2706_v16, %v1586_v60  ;;  %v1645_v4 = vadd.f32 %v2709_v18, %v1587_v11  ;;  %v1442_v37 = vmax.f32 %v1428_v30, 0.0  ;;  %v1270_v54 = vpop.xlane.xlu1 %1269 }
 0x2c9   :  { %v1646_v61 = vadd.f32 %v2703_v9, %v1588_v47  ;;  %v1647_v22 = vadd.f32 %v2706_v16, %v1589_v49  ;;  %v1648_v43 = vadd.f32 %v2709_v18, %v1590_v26  ;;  %v1455_v39 = vadd.f32 1e-05, %v1441_v34 }
 0x2ca   :  { %1685 = vst [vmem:[#allocation10 + $0x48] sm:$0xff] %v1643_v1  ;;  %1686 = vst [vmem:[#allocation10 + $0x50] sm:$0xff] %v1644_v21  ;;  %v1491_v32 = vsub.f32 %v2511_v13, %v2716_v35  ;;  %v1456_v7 = vadd.f32 1e-05, %v1442_v37  ;;  %v1492_v0 = vsub.f32 %v2507_v19, %v2716_v35  ;;  %v1493_v52 = vsub.f32 %v2518_v58, %v2716_v35 }
 0x2cb   :  { %1687 = vst [vmem:[#allocation10 + $0x58] sm:$0xff] %v1645_v4  ;;  %1688 = vst [vmem:[#allocation10 + $0x60] sm:$0xff] %v1646_v61  ;;  %v1494_v36 = vsub.f32 %v2521_v20, %v2718_v53  ;;  %2069 = vrsqrt.f32 %v1455_v39  ;;  %v1495_v27 = vsub.f32 %v2526_v25, %v2718_v53  ;;  %v1415_v13 = vmul.f32 %v2772_v12, %v2772_v12  ;;  %v2066_v50 = vpop.eup %2065 }
 0x2cc   :  { %1689 = vst [vmem:[#allocation10 + $0x68] sm:$0xff] %v1647_v22  ;;  %1690 = vst [vmem:[#allocation10 + $0x70] sm:$0xff] %v1648_v43  ;;  %2071 = vrsqrt.f32 %v1456_v7  ;;  %v1401_v57 = vmul.f32 0.0026041667, %v1375_v14  ;;  %v1496_v51 = vsub.f32 %v2533_v40, %v2718_v53  ;;  %v1416_v19 = vmul.f32 %v2774_v2, %v2774_v2  ;;  %v1383_v61 = vpop.xlane.xlu1 %1382 }
 0x2cd   :  { %v1402_v58 = vmul.f32 0.0026041667, %v1379_v45  ;;  %v2804_v35 = vmul.f32 0.0026041667, %v1270_v54  ;;  %v1533_v6 = vmul.f32 %v2066_v50, %v1491_v32  ;;  %v1534_v29 = vmul.f32 %v2066_v50, %v1492_v0 }
 0x2ce   :  { %v2068_v20 = vpop.eup %2067  ;;  %v1535_v10 = vmul.f32 %v2066_v50, %v1493_v52  ;;  %v1429_v25 = vsub.f32 %v1401_v57, %v1415_v13  ;;  %v1403_v54 = vmul.f32 0.0026041667, %v1383_v61  ;;  %v1497_v0 = vsub.f32 %v2543_v62, %v2746_v33 }
 0x2cf   :  { %v1536_v5 = vmul.f32 %v2068_v20, %v1494_v36  ;;  %v1537_v48 = vmul.f32 %v2068_v20, %v1495_v27  ;;  %v1538_v60 = vmul.f32 %v2068_v20, %v1496_v51  ;;  %v1430_v11 = vsub.f32 %v1402_v58, %v1416_v19 }
 0x2d0   :  { %v1591_v14 = vmul.f32 %v2694_v63, %v1533_v6  ;;  %v1592_v30 = vmul.f32 %v2697_v41, %v1534_v29  ;;  %v1593_v40 = vmul.f32 %v2700_v31, %v1535_v10  ;;  %v1443_v53 = vmax.f32 %v1429_v25, 0.0 }
 0x2d1   :  { %v1594_v47 = vmul.f32 %v2694_v63, %v1536_v5  ;;  %v1595_v49 = vmul.f32 %v2697_v41, %v1537_v48  ;;  %v1596_v26 = vmul.f32 %v2700_v31, %v1538_v60  ;;  %v1444_v34 = vmax.f32 %v1430_v11, 0.0 }
 0x2d2   :  { %v1649_v1 = vadd.f32 %v2703_v9, %v1591_v14  ;;  %v1650_v21 = vadd.f32 %v2706_v16, %v1592_v30  ;;  %v1651_v4 = vadd.f32 %v2709_v18, %v1593_v40  ;;  %v1457_v37 = vadd.f32 1e-05, %v1443_v53  ;;  %v1274_v22 = vpop.xlane.xlu0 %1273 }
 0x2d3   :  { %v1652_v43 = vadd.f32 %v2703_v9, %v1594_v47  ;;  %v1653_v39 = vadd.f32 %v2706_v16, %v1595_v49  ;;  %v1654_v32 = vadd.f32 %v2709_v18, %v1596_v26  ;;  %v1458_v7 = vadd.f32 1e-05, %v1444_v34 }
 0x2d4   :  { %1691 = vst [vmem:[#allocation10 + $0x78] sm:$0xff] %v1649_v1  ;;  %1692 = vst [vmem:[#allocation10 + $0x80] sm:$0xff] %v1650_v21  ;;  %2073 = vrsqrt.f32 %v1457_v37  ;;  %v1417_v45 = vmul.f32 %v2804_v35, %v2804_v35  ;;  %v1498_v36 = vsub.f32 %v2546_v24, %v2746_v33  ;;  %v1499_v27 = vsub.f32 %v2554_v8, %v2746_v33 }
 0x2d5   :  { %1693 = vst [vmem:[#allocation10 + $0x88] sm:$0xff] %v1651_v4  ;;  %1694 = vst [vmem:[#allocation10 + $0x90] sm:$0xff] %v1652_v43  ;;  %2075 = vrsqrt.f32 %v1458_v7  ;;  %v1500_v13 = vsub.f32 %v2557_v17, %v2751_v55  ;;  %v1501_v19 = vsub.f32 %v2564_v15, %v2751_v55  ;;  %v1502_v58 = vsub.f32 %v2571_v23, %v2751_v55 }
 0x2d6   :  { %1695 = vst [vmem:[#allocation10 + $0x98] sm:$0xff] %v1653_v39  ;;  %1696 = vst [vmem:[#allocation10 + $0xa0] sm:$0xff] %v1654_v32  ;;  %v1278_v52 = vpop.xlane.xlu1 %1277  ;;  %v1431_v57 = vsub.f32 %v1403_v54, %v1417_v45  ;;  %v1387_v50 = vpop.xlane.xlu0 %1386  ;;  %v2832_v62 = vmul.f32 0.0026041667, %v1274_v22  ;;  %v1503_v61 = vsub.f32 %v2583_v42, %v2772_v12  ;;  %v1504_v22 = vsub.f32 %v2579_v44, %v2772_v12 }
 0x2d7   :  { %v2834_v20 = vmul.f32 0.0026041667, %v1278_v52  ;;  %v1404_v5 = vmul.f32 0.0026041667, %v1387_v50  ;;  %v1505_v43 = vsub.f32 %v2590_v3, %v2772_v12  ;;  %v1506_v39 = vsub.f32 %v2593_v46, %v2774_v2 }
 0x2d8   :  { %v2070_v51 = vpop.eup %2069  ;;  %v1445_v33 = vmax.f32 %v1431_v57, 0.0  ;;  %v1418_v30 = vmul.f32 %v2832_v62, %v2832_v62  ;;  %v1507_v7 = vsub.f32 %v2598_v28, %v2774_v2  ;;  %v1508_v45 = vsub.f32 %v2605_v56, %v2774_v2 }
 0x2d9   :  { %v2072_v24 = vpop.eup %2071  ;;  %v1539_v6 = vmul.f32 %v2070_v51, %v1497_v0  ;;  %v1540_v29 = vmul.f32 %v2070_v51, %v1498_v36  ;;  %v1541_v8 = vmul.f32 %v2070_v51, %v1499_v27  ;;  %v1419_v4 = vmul.f32 %v2834_v20, %v2834_v20 }
 0x2da   :  { %v1542_v10 = vmul.f32 %v2072_v24, %v1500_v13  ;;  %v1543_v17 = vmul.f32 %v2072_v24, %v1501_v19  ;;  %v1544_v25 = vmul.f32 %v2072_v24, %v1502_v58  ;;  %v1459_v23 = vadd.f32 1e-05, %v1445_v33  ;;  %v1391_v40 = vpop.xlane.xlu1 %1390 }
 0x2db   :  { %v1597_v48 = vmul.f32 %v2694_v63, %v1539_v6  ;;  %v1598_v15 = vmul.f32 %v2697_v41, %v1540_v29  ;;  %v1599_v60 = vmul.f32 %v2700_v31, %v1541_v8  ;;  %v1432_v21 = vsub.f32 %v1404_v5, %v1418_v30 }
 0x2dc   :  { %v1600_v55 = vmul.f32 %v2694_v63, %v1542_v10  ;;  %v1601_v11 = vmul.f32 %v2697_v41, %v1543_v17  ;;  %v1602_v14 = vmul.f32 %v2700_v31, %v1544_v25  ;;  %2077 = vrsqrt.f32 %v1459_v23  ;;  %v2940_v25 = vld [vmem:[#allocation15_spill] sm:$0xff] }
 0x2dd   :  { %v1655_v53 = vadd.f32 %v2703_v9, %v1597_v48  ;;  %v1656_v47 = vadd.f32 %v2706_v16, %v1598_v15  ;;  %v1657_v49 = vadd.f32 %v2709_v18, %v1599_v60  ;;  %v1405_v37 = vmul.f32 0.0026041667, %v1391_v40 }
 0x2de   :  { %v1658_v26 = vadd.f32 %v2703_v9, %v1600_v55  ;;  %v1659_v34 = vadd.f32 %v2706_v16, %v1601_v11  ;;  %v1660_v1 = vadd.f32 %v2709_v18, %v1602_v14  ;;  %v1446_v54 = vmax.f32 %v1432_v21, 0.0 }
 0x2df   :  { %1697 = vst [vmem:[#allocation10 + $0xa8] sm:$0xff] %v1655_v53  ;;  %1698 = vst [vmem:[#allocation10 + $0xb0] sm:$0xff] %v1656_v47  ;;  %v1433_v0 = vsub.f32 %v1405_v37, %v1419_v4  ;;  %v1509_v10 = vsub.f32 %v2619_v59, %v2804_v35  ;;  %v1510_v17 = vsub.f32 %v2615_v38, %v2804_v35  ;;  %v2941_v38 = vld [vmem:[#allocation17_spill] sm:$0xff]  ;;  %v2942_v53 = vld [vmem:[#allocation16_spill] sm:$0xff] }
 0x2e0   :  { %1699 = vst [vmem:[#allocation10 + $0xb8] sm:$0xff] %v1657_v49  ;;  %1700 = vst [vmem:[#allocation10 + $0xc0] sm:$0xff] %v1658_v26  ;;  %v1460_v3 = vadd.f32 1e-05, %v1446_v54  ;;  %v1511_v5 = vsub.f32 %v2940_v25, %v2804_v35  ;;  %v1512_v35 = vsub.f32 %v2941_v38, %v2832_v62  ;;  %v1513_v47 = vsub.f32 %v2942_v53, %v2832_v62  ;;  %v2943_v49 = vld [vmem:[#allocation19_spill] sm:$0xff]  ;;  %v2944_v37 = vld [vmem:[#allocation20_spill] sm:$0xff] }
 0x2e1   :  { %1701 = vst [vmem:[#allocation10 + $0xc8] sm:$0xff] %v1659_v34  ;;  %1702 = vst [vmem:[#allocation10 + $0xd0] sm:$0xff] %v1660_v1  ;;  %v2074_v32 = vpop.eup %2073  ;;  %v1447_v28 = vmax.f32 %v1433_v0, 0.0  ;;  %v1514_v26 = vsub.f32 %v2943_v49, %v2832_v62 }
 0x2e2   :  { %v2076_v52 = vpop.eup %2075  ;;  %v1545_v42 = vmul.f32 %v2074_v32, %v1503_v61  ;;  %v1546_v36 = vmul.f32 %v2074_v32, %v1504_v22  ;;  %v1547_v27 = vmul.f32 %v2074_v32, %v1505_v43  ;;  %2079 = vrsqrt.f32 %v1460_v3  ;;  %v2945_v22 = vld [vmem:[#allocation18_spill] sm:$0xff] }
 0x2e3   :  { %v1548_v44 = vmul.f32 %v2076_v52, %v1506_v39  ;;  %v1549_v13 = vmul.f32 %v2076_v52, %v1507_v7  ;;  %v1550_v57 = vmul.f32 %v2076_v52, %v1508_v45  ;;  %v1461_v6 = vadd.f32 1e-05, %v1447_v28  ;;  %v2946_v39 = vld [vmem:[#allocation21_spill] sm:$0xff] }
 0x2e4   :  { %v1603_v12 = vmul.f32 %v2694_v63, %v1545_v42  ;;  %v1604_v46 = vmul.f32 %v2697_v41, %v1546_v36  ;;  %v1605_v50 = vmul.f32 %v2700_v31, %v1547_v27  ;;  %v1515_v61 = vsub.f32 %v2944_v37, %v2834_v20 }
 0x2e5   :  { %v1606_v51 = vmul.f32 %v2694_v63, %v1548_v44  ;;  %v1607_v56 = vmul.f32 %v2697_v41, %v1549_v13  ;;  %v1608_v2 = vmul.f32 %v2700_v31, %v1550_v57  ;;  %2081 = vrsqrt.f32 %v1461_v6 }
 0x2e6   :  { %v1661_v19 = vadd.f32 %v2703_v9, %v1603_v12  ;;  %v1662_v58 = vadd.f32 %v2706_v16, %v1604_v46  ;;  %v1663_v24 = vadd.f32 %v2709_v18, %v1605_v50  ;;  %v1516_v43 = vsub.f32 %v2945_v22, %v2834_v20 }
 0x2e7   :  { %v1664_v29 = vadd.f32 %v2703_v9, %v1606_v51  ;;  %v1665_v8 = vadd.f32 %v2706_v16, %v1607_v56  ;;  %v1666_v33 = vadd.f32 %v2709_v18, %v1608_v2  ;;  %v1517_v32 = vsub.f32 %v2946_v39, %v2834_v20 }
 0x2e8   :  { %1703 = vst [vmem:[#allocation10 + $0xd8] sm:$0xff] %v1661_v19  ;;  %1704 = vst [vmem:[#allocation10 + $0xe0] sm:$0xff] %v1662_v58 }
 0x2e9   :  { %1705 = vst [vmem:[#allocation10 + $0xe8] sm:$0xff] %v1663_v24  ;;  %1706 = vst [vmem:[#allocation10 + $0xf0] sm:$0xff] %v1664_v29  ;;  %v2078_v48 = vpop.eup %2077 }
 0x2ea   :  { %1707 = vst [vmem:[#allocation10 + $0xf8] sm:$0xff] %v1665_v8  ;;  %1708 = vst [vmem:[#allocation10 + $0x100] sm:$0xff] %v1666_v33  ;;  %v1551_v15 = vmul.f32 %v2078_v48, %v1509_v10  ;;  %v1552_v60 = vmul.f32 %v2078_v48, %v1510_v17  ;;  %v1553_v23 = vmul.f32 %v2078_v48, %v1511_v5 }
 0x2ec   :  { %v1609_v55 = vmul.f32 %v2694_v63, %v1551_v15  ;;  %v1610_v11 = vmul.f32 %v2697_v41, %v1552_v60  ;;  %v1611_v14 = vmul.f32 %v2700_v31, %v1553_v23 }
 0x2ee   :  { %v1667_v30 = vadd.f32 %v2703_v9, %v1609_v55  ;;  %v1668_v59 = vadd.f32 %v2706_v16, %v1610_v11  ;;  %v1669_v40 = vadd.f32 %v2709_v18, %v1611_v14 }
 0x2ef   :  { %v2080_v34 = vpop.eup %2079 }
 0x2f0   :  { %1709 = vst [vmem:[#allocation10 + $0x108] sm:$0xff] %v1667_v30  ;;  %1710 = vst [vmem:[#allocation10 + $0x110] sm:$0xff] %v1668_v59  ;;  %v1554_v1 = vmul.f32 %v2080_v34, %v1512_v35  ;;  %v1555_v21 = vmul.f32 %v2080_v34, %v1513_v47  ;;  %v1556_v4 = vmul.f32 %v2080_v34, %v1514_v26 }
 0x2f1   :  { %1711 = vst [vmem:[#allocation10 + $0x118] sm:$0xff] %v1669_v40 }
 0x2f2   :  { %v2082_v7 = vpop.eup %2081  ;;  %v1612_v45 = vmul.f32 %v2694_v63, %v1554_v1  ;;  %v1613_v54 = vmul.f32 %v2697_v41, %v1555_v21  ;;  %v1614_v62 = vmul.f32 %v2700_v31, %v1556_v4 }
 0x2f3   :  { %v1557_v0 = vmul.f32 %v2082_v7, %v1515_v61  ;;  %v1558_v52 = vmul.f32 %v2082_v7, %v1516_v43  ;;  %v1559_v42 = vmul.f32 %v2082_v7, %v1517_v32 }
 0x2f4   :  { %v1670_v36 = vadd.f32 %v2703_v9, %v1612_v45  ;;  %v1671_v27 = vadd.f32 %v2706_v16, %v1613_v54  ;;  %v1672_v44 = vadd.f32 %v2709_v18, %v1614_v62 }
 0x2f5   :  { %v1615_v13 = vmul.f32 %v2694_v63, %v1557_v0  ;;  %v1616_v20 = vmul.f32 %v2697_v41, %v1558_v52  ;;  %v1617_v57 = vmul.f32 %v2700_v31, %v1559_v42 }
 0x2f6   :  { %1712 = vst [vmem:[#allocation10 + $0x120] sm:$0xff] %v1670_v36  ;;  %1713 = vst [vmem:[#allocation10 + $0x128] sm:$0xff] %v1671_v27 }
 0x2f7   :  { %1714 = vst [vmem:[#allocation10 + $0x130] sm:$0xff] %v1672_v44  ;;  %v1673_v3 = vadd.f32 %v2703_v9, %v1615_v13  ;;  %v1674_v12 = vadd.f32 %v2706_v16, %v1616_v20  ;;  %v1675_v46 = vadd.f32 %v2709_v18, %v1617_v57 }
 0x2f9   :  { %1715 = vst [vmem:[#allocation10 + $0x138] sm:$0xff] %v1673_v3  ;;  %1716 = vst [vmem:[#allocation10 + $0x140] sm:$0xff] %v1674_v12 }
 0x2fa   :  { %1717 = vst [vmem:[#allocation10 + $0x148] sm:$0xff] %v1675_v46 }
 0x2fb   :  { %1722 = vsyncadd [#allocation4], 384  ;;  %s2202_s5 = smov [#allocation10]  }
 0x2fc   :  { %s1723_s6 = sshll.u32 %s2202_s5, 4  ;;  %s1724_s6 = int_to_ptr.vmem [resolvable:$true] %s1723_s6 }
 0x2fd   :  { %s2163_s29 = scalar_lea.vmem %s1724_s6, 4992  ;;  %s2167_s30 = scalar_lea.vmem %s1724_s6, 5376 }
 0x2fe   :  { %p2164_p6 = scmp.ne.s32.totalorder %s1724_s6, %s2163_s29  ;;  %p2168_p7 = scmp.lt.s32.totalorder %s1724_s6, %s1724_s6 }
 0x2ff   :  { %p2169_p8 = scmp.lt.s32.totalorder %s2167_s30, %s2163_s29 }
 0x301   :  { %p2170_p9 = por %p2169_p8, %p2168_p7 }
 0x303   :  { %p2171_p10 = pnand %p2170_p9, %p2164_p6 }
 0x305   :  { %2174 = shalt.err (!%p2171_p10)
}
 0x306   :  { %1729 = dma.vmem_to_hbm [thread:$0]  %s1724_s6, 4992, %s2925_s7, [#allocation4], %s2195_s12, %s2195_s12, %s2196_s13  }
 0x307   :  { %2189 = dma.done.wait [#allocation4], 5376  }
 0x308   :  { %2190 = vsyncadd [#allocation4], 4294961920 }
 0x309   :  { %1733 = vsyncpa [#allocation3], 1 }
 0x30a   :  { %1734 = vsyncpa [#allocation6], 1 }
 0x30b   :  { %1735 = vsyncpa [#allocation9], 1 }
 0x30c   :  { %1736 = vsyncpa [#allocation4], 1 }

</bundles_post_ra>
